<compile_context>
chip_gen: v6e
topology: v6e:2x2x1
jax: 0.10.0
libtpu: 0.0.40
codegen_flags: <defaults>
</compile_context>

<pallas_src>
import functools

import jax
import jax.numpy as jnp
from jax.experimental import pallas as pl
from jax.experimental.pallas import tpu as pltpu

_BN_EPS = 1e-5
_LANE = 128          # pad feature dims to lane-dense multiples of this
_MAX_TILE_B = 1024   # per-grid-step overhead is amortized by ~512 rows; cap at 1024


def _round_up(v, m):
    return ((v + m - 1) // m) * m


def _vmem_limit_bytes():
    """Scoped-VMEM limit from the real chip capacity (v5e/v6e: 128 MiB, v7x: 64 MiB),
    leaving ~20% headroom for compiler-internal scratch."""
    cap = 64 << 20
    try:
        info = pltpu.get_tpu_info()
        cap = int(getattr(info, "vmem_capacity_bytes", cap))
    except Exception:
        pass
    return max(32 << 20, int(cap * 0.8))


def _plan_tiling(batch, input_dim_p, emb_dim_p, x_itemsize, w_itemsize,
                 tile_b, stage_h, vmem_limit, sublane):
    """Pick tile_b and decide whether the full post-fc1 activation h fits in VMEM."""
    # Resident params: budget for 2 buffers each in case Buffered(1) is unavailable.
    resident = 2 * ((2 * input_dim_p * emb_dim_p) * w_itemsize
                    + (3 * emb_dim_p + input_dim_p) * w_itemsize)
    # BN + loss-vector scratch (sublane-padded to 8 rows).
    scratch = (2 * emb_dim_p + input_dim_p) * 8 * 4
    avail = max(vmem_limit - resident - scratch - (2 << 20), 1 << 20)

    per_row = 4 * input_dim_p * x_itemsize          # x + y tiles, double-buffered
    if tile_b is None:
        tb = (avail // 2) // per_row                # keep half of `avail` for h staging
        tb = max(sublane, (tb // sublane) * sublane)
        tb = min(tb, _MAX_TILE_B, _round_up(batch, sublane))
        if tb >= 512:
            tb = (tb // 256) * 256                  # MXU-friendly (256-wide on v6e/v7x)
        elif tb >= 128:
            tb = (tb // 128) * 128
        tile_b = tb
    else:
        tile_b = max(sublane, _round_up(int(tile_b), sublane))

    n_tiles = pl.cdiv(batch, tile_b)
    padded_batch = n_tiles * tile_b

    if stage_h is None:
        stage_bytes = padded_batch * emb_dim_p * 4  # h staged as f32
        stage_h = stage_bytes <= max(avail - per_row * tile_b, 0)
    return tile_b, int(n_tiles), padded_batch, bool(stage_h)


def _autoencoder_loss_kernel(
    x_ref, y_ref, w1_ref, b1_ref, gamma_ref, beta_ref, w2_ref, b2_ref,
    loss_ref,                                   # (1, 1) f32 output (SMEM)
    bn_sum_ref, bn_sumsq_ref, loss_vec_ref,     # VMEM scratch
    *maybe_h_stage,                             # optional (n_tiles, tile_b, E) h stage
    loss_type, true_b, true_d, tile_b, stage_h, padded_rows, cast_bf16):
    h_stage_ref = maybe_h_stage[0] if stage_h else None
    phase = pl.program_id(0)      # 0: BN statistics, 1: normalize + fc2 + loss
    tile = pl.program_id(1)
    n_tiles = pl.num_programs(1)

    def fc1():
        xv = x_ref[...]
        w1 = w1_ref[...]
        if cast_bf16 and xv.dtype == jnp.float32:
            xv = xv.astype(jnp.bfloat16)
            w1 = w1.astype(jnp.bfloat16)
        return (jnp.dot(xv, w1, preferred_element_type=jnp.float32)
                + b1_ref[...].astype(jnp.float32))           # (TILE_B, E)

    if padded_rows:
        row_ids = tile * tile_b + jax.lax.broadcasted_iota(jnp.int32, (tile_b, 1), 0)
        row_valid = row_ids < true_b                         # (TILE_B, 1)
    else:
        row_valid = None

    @pl.when(jnp.logical_and(phase == 0, tile == 0))
    def _init():
        bn_sum_ref[...] = jnp.zeros_like(bn_sum_ref)
        bn_sumsq_ref[...] = jnp.zeros_like(bn_sumsq_ref)
        loss_vec_ref[...] = jnp.zeros_like(loss_vec_ref)

    @pl.when(phase == 0)
    def _accumulate_bn_stats():
        h_lin = fc1()
        if stage_h:
            h_stage_ref[tile] = h_lin                        # reused in phase 1
        hm = h_lin if row_valid is None else jnp.where(row_valid, h_lin, 0.0)
        bn_sum_ref[...] += jnp.sum(hm, axis=0, keepdims=True)
        bn_sumsq_ref[...] += jnp.sum(hm * hm, axis=0, keepdims=True)

    @pl.when(phase == 1)
    def _normalize_and_loss():
        if stage_h:
            h_lin = h_stage_ref[tile]                        # no fc1 recompute / x re-read
        else:
            h_lin = fc1()

        inv_b = jnp.float32(1.0 / true_b)
        mean = bn_sum_ref[...] * inv_b                       # (1, E)
        # biased (train-mode) variance; clamp against cancellation going negative
        var = jnp.maximum(bn_sumsq_ref[...] * inv_b - mean * mean, 0.0)
        scale = jax.lax.rsqrt(var + _BN_EPS) * gamma_ref[...].astype(jnp.float32)
        shift = beta_ref[...].astype(jnp.float32)

        h = jnp.maximum((h_lin - mean) * scale + shift, 0.0)  # BN + ReLU

        w2 = w2_ref[...]
        if cast_bf16 and w2.dtype == jnp.float32:
            h_mm = h.astype(jnp.bfloat16)
            w2 = w2.astype(jnp.bfloat16)
        else:
            h_mm = h.astype(w2.dtype)
        x_hat = (jnp.dot(h_mm, w2, preferred_element_type=jnp.float32)
                 + b2_ref[...].astype(jnp.float32))           # (TILE_B, D)
        y = y_ref[...].astype(jnp.float32)

        if loss_type == "l2":                                 # nn.MSELoss (mean)
            d = x_hat - y
            per_elem = d * d
        elif loss_type == "l1":                               # nn.L1Loss (mean)
            per_elem = jnp.abs(x_hat - y)
        else:                                                 # cosine_similarity(p, z)
            # F.normalize: v / max(||v||, 1e-12)  ==  v * min(rsqrt(||v||^2), 1e12)
            p_inv = jnp.minimum(
                jax.lax.rsqrt(jnp.sum(x_hat * x_hat, axis=1, keepdims=True)), 1e12)
            z_inv = jnp.minimum(
                jax.lax.rsqrt(jnp.sum(y * y, axis=1, keepdims=True)), 1e12)
            per_elem = -(x_hat * y) * (p_inv * z_inv)

        if row_valid is not None:
            per_elem = jnp.where(row_valid, per_elem, 0.0)
        # Sublane-only reduce per tile; the cross-lane reduce happens once at finalize.
        loss_vec_ref[...] += jnp.sum(per_elem, axis=0, keepdims=True)

        @pl.when(tile == n_tiles - 1)
        def _finalize():
            if loss_type in ("l2", "l1"):
                denom = 1.0 / (true_b * true_d)
            else:
                denom = 1.0 / true_b
            loss_ref[0, 0] = jnp.sum(loss_vec_ref[...]) * jnp.float32(denom)


def autoencoder_loss(x, y, params, *, loss_type="l2", detach_target=True,
                     tile_b=None, stage_h=None, cast_bf16_matmul=False):
    """Forward pass of AutoEncoder: returns scalar loss (float32)."""
    if loss_type not in ("l1", "l2", "cosine"):
        raise ValueError(f"unsupported loss: {loss_type}")
    if detach_target:
        y = jax.lax.stop_gradient(y)  # value-identical in the forward pass

    w1, b1, gamma, beta, w2, b2 = (
        params["w1"], params["b1"], params["gamma"], params["beta"],
        params["w2"], params["b2"])

    batch, input_dim = x.shape
    emb_dim = w1.shape[1]

    # --- lane-dense feature dims: pad to multiples of 128 ---------------------------
    # Zero-padded weight/bias/gamma/beta columns keep padded h / x_hat columns exactly
    # zero, so BN stats and the loss need no extra column masking.
    input_dim_p = _round_up(input_dim, _LANE)
    emb_dim_p = _round_up(emb_dim, _LANE)
    if emb_dim_p != emb_dim:
        pe = emb_dim_p - emb_dim
        w1 = jnp.pad(w1, ((0, 0), (0, pe)))
        b1 = jnp.pad(b1, ((0, 0), (0, pe)))
        gamma = jnp.pad(gamma, ((0, 0), (0, pe)))
        beta = jnp.pad(beta, ((0, 0), (0, pe)))
        w2 = jnp.pad(w2, ((0, pe), (0, 0)))
    if input_dim_p != input_dim:
        pd = input_dim_p - input_dim
        w1 = jnp.pad(w1, ((0, pd), (0, 0)))
        w2 = jnp.pad(w2, ((0, 0), (0, pd)))
        b2 = jnp.pad(b2, ((0, 0), (0, pd)))
        x = jnp.pad(x, ((0, 0), (0, pd)))
        y = jnp.pad(y, ((0, 0), (0, pd)))

    # --- VMEM-aware tiling / staging plan --------------------------------------------
    sublane = 16 if (x.dtype == jnp.bfloat16 or cast_bf16_matmul) else 8
    vmem_limit = _vmem_limit_bytes()
    tile_b, n_tiles, padded_batch, stage_h = _plan_tiling(
        batch, input_dim_p, emb_dim_p,
        jnp.dtype(x.dtype).itemsize, jnp.dtype(w1.dtype).itemsize,
        tile_b, stage_h, vmem_limit, sublane)

    padded_rows = padded_batch != batch
    if padded_rows:
        pad = padded_batch - batch
        x = jnp.pad(x, ((0, pad), (0, 0)))
        y = jnp.pad(y, ((0, pad), (0, 0)))

    kernel = functools.partial(
        _autoencoder_loss_kernel,
        loss_type=loss_type, true_b=batch, true_d=input_dim, tile_b=tile_b,
        stage_h=stage_h, padded_rows=padded_rows, cast_bf16=cast_bf16_matmul)

    grid = (2, n_tiles)   # (phase, batch tile): BN-stats pass must finish first

    # x: streamed in phase 0; when h is staged it is NOT re-read in phase 1 (pinned).
    if stage_h:
        x_map = lambda p, i: (i * (1 - p), 0)
    else:
        x_map = lambda p, i: (i, 0)
    # y: only needed in phase 1 -> pinned to block 0 during phase 0 (no wasted DMA).
    y_map = lambda p, i: (i * p, 0)

    scratch_shapes = [
        pltpu.VMEM((1, emb_dim_p), jnp.float32),     # BN sum
        pltpu.VMEM((1, emb_dim_p), jnp.float32),     # BN sum of squares
        pltpu.VMEM((1, input_dim_p), jnp.float32),   # loss row-vector accumulator
    ]
    if stage_h:
        scratch_shapes.append(
            pltpu.VMEM((n_tiles, tile_b, emb_dim_p), jnp.float32))  # staged h

    def build(use_buffered):
        def const_spec(shape):
            idx = lambda p, i: (0, 0)
            if use_buffered:
                try:
                    # Constant-index operands never re-DMA: one buffer is enough.
                    return pl.BlockSpec(shape, idx, pipeline_mode=pl.Buffered(1))
                except TypeError:
                    return pl.BlockSpec(shape, idx)
            return pl.BlockSpec(shape, idx)

        in_specs = [
            pl.BlockSpec((tile_b, input_dim_p), x_map),    # x  (pipelined per tile)
            pl.BlockSpec((tile_b, input_dim_p), y_map),    # y  (phase-1 only)
            const_spec((input_dim_p, emb_dim_p)),          # w1 (resident)
            const_spec((1, emb_dim_p)),                    # b1
            const_spec((1, emb_dim_p)),                    # gamma
            const_spec((1, emb_dim_p)),                    # beta
            const_spec((emb_dim_p, input_dim_p)),          # w2 (resident)
            const_spec((1, input_dim_p)),                  # b2
        ]
        out_specs = pl.BlockSpec((1, 1), lambda p, i: (0, 0),
                                 memory_space=pltpu.MemorySpace.SMEM)
        return pl.pallas_call(
            kernel,
            out_shape=jax.ShapeDtypeStruct((1, 1), jnp.float32),
            grid_spec=pltpu.PrefetchScalarGridSpec(
                num_scalar_prefetch=0,
                grid=grid,
                in_specs=in_specs,
                out_specs=out_specs,
                scratch_shapes=scratch_shapes),
            compiler_params=pltpu.CompilerParams(
                # Both axes carry cross-step accumulators -> sequential.
                dimension_semantics=("arbitrary", "arbitrary"),
                vmem_limit_bytes=vmem_limit),
        )

    args = (x, y, w1, b1, gamma, beta, w2, b2)
    try:
        out = build(use_buffered=True)(*args)
    except Exception:
        # pipeline_mode=pl.Buffered(1) unsupported by this jax/libtpu build:
        # fall back to default double-buffered resident params.
        out = build(use_buffered=False)(*args)
    return out[0, 0]


def init_params(key, input_dim, emb_dim, dtype=jnp.float32):
    """Deterministic synthetic parameter init (matches PyTorch layer shapes)."""
    k1, k2, k3, k4 = jax.random.split(key, 4)
    s1 = 1.0 / jnp.sqrt(input_dim)
    s2 = 1.0 / jnp.sqrt(emb_dim)
    return {
        # Linear(input_dim, emb_dim): weight (emb, in) stored transposed as (in, emb)
        "w1": jax.random.uniform(k1, (input_dim, emb_dim), dtype, -s1, s1),
        "b1": jax.random.uniform(k2, (1, emb_dim), dtype, -s1, s1),
        # BatchNorm1d(emb_dim)
        "gamma": jnp.ones((1, emb_dim), dtype),
        "beta": jnp.zeros((1, emb_dim), dtype),
        # Linear(emb_dim, input_dim): stored transposed as (emb, in)
        "w2": jax.random.uniform(k3, (emb_dim, input_dim), dtype, -s2, s2),
        "b2": jax.random.uniform(k4, (1, input_dim), dtype, -s2, s2),
    }


def _reference_loss(x, y, params, loss_type):
    """Pure-JAX reference of the same forward pass (for sanity checking)."""
    h = x @ params["w1"] + params["b1"]
    mean = jnp.mean(h, axis=0, keepdims=True)
    var = jnp.mean((h - mean) ** 2, axis=0, keepdims=True)
    h = (h - mean) / jnp.sqrt(var + _BN_EPS) * params["gamma"] + params["beta"]
    h = jnp.maximum(h, 0.0)
    x_hat = h @ params["w2"] + params["b2"]
    if loss_type == "l2":
        return jnp.mean((x_hat - y) ** 2)
    if loss_type == "l1":
        return jnp.mean(jnp.abs(x_hat - y))
    p = x_hat / jnp.maximum(jnp.linalg.norm(x_hat, axis=1, keepdims=True), 1e-12)
    z = y / jnp.maximum(jnp.linalg.norm(y, axis=1, keepdims=True), 1e-12)
    return jnp.mean(-jnp.sum(p * z, axis=1))


if __name__ == "__main__":
    input_dim = 32
    emb_dim = 16
    key = jax.random.PRNGKey(0)
    kp, kd = jax.random.split(key)
    params = init_params(kp, input_dim, emb_dim)

    # (batch, loss_type, tile_b, stage_h) — exercises: auto plan + staged-h single
    # tile, multi-tile + row padding with fc1 recompute, multi-tile staged-h.
    configs = [
        (8, "l2", None, None),
        (20, "l1", 8, False),     # 3 tiles of 8, 4 padded (masked) rows, recompute path
        (16, "cosine", 8, True),  # 2 tiles, staged-h path
    ]
    for batch, loss_type, tile_b, stage in configs:
        kx, ky, kd = jax.random.split(kd, 3)
        x = jax.random.normal(kx, (batch, input_dim), jnp.float32)
        y = jax.random.normal(ky, (batch, input_dim), jnp.float32)

        loss = autoencoder_loss(x, y, params, loss_type=loss_type,
                                detach_target=True, tile_b=tile_b, stage_h=stage)
        loss = jax.block_until_ready(loss)
        ref = _reference_loss(x, y, params, loss_type)
        assert jnp.allclose(loss, ref, rtol=1e-4, atol=1e-5), (loss_type, loss, ref)

    print("KERNEL_OK")
</pallas_src>

<mosaic_0001>
module attributes {stable_mosaic.version = 11 : i64} {
  func.func @_autoencoder_loss_kernel(%arg0: i32, %arg1: i32, %arg2: memref<8x128xf32, #tpu.memory_space<vmem>>, %arg3: memref<8x128xf32, #tpu.memory_space<vmem>>, %arg4: memref<128x128xf32, #tpu.memory_space<vmem>>, %arg5: memref<1x128xf32, #tpu.memory_space<vmem>>, %arg6: memref<1x128xf32, #tpu.memory_space<vmem>>, %arg7: memref<1x128xf32, #tpu.memory_space<vmem>>, %arg8: memref<128x128xf32, #tpu.memory_space<vmem>>, %arg9: memref<1x128xf32, #tpu.memory_space<vmem>>, %arg10: memref<1x1xf32, #tpu.memory_space<smem>>, %arg11: memref<1x128xf32, #tpu.memory_space<vmem>>, %arg12: memref<1x128xf32, #tpu.memory_space<vmem>>, %arg13: memref<1x128xf32, #tpu.memory_space<vmem>>, %arg14: memref<1x8x128xf32, #tpu.memory_space<vmem>>) attributes {dimension_semantics = [#tpu.dimension_semantics<arbitrary>, #tpu.dimension_semantics<arbitrary>], iteration_bounds = array<i64: 2, 1>, scalar_prefetch = 0 : i64, scratch_operands = 4 : i64, tpu.core_type = #tpu.core_type<tc>, window_params = [{transform_indices = @transform_0, window_bounds = array<i64: 8, 128>}, {transform_indices = @transform_1, window_bounds = array<i64: 8, 128>}, {pipeline_mode = #tpu.pipeline_mode<synchronous>, transform_indices = @transform_2, window_bounds = array<i64: 128, 128>}, {pipeline_mode = #tpu.pipeline_mode<synchronous>, transform_indices = @transform_3, window_bounds = array<i64: 1, 128>}, {pipeline_mode = #tpu.pipeline_mode<synchronous>, transform_indices = @transform_4, window_bounds = array<i64: 1, 128>}, {pipeline_mode = #tpu.pipeline_mode<synchronous>, transform_indices = @transform_5, window_bounds = array<i64: 1, 128>}, {pipeline_mode = #tpu.pipeline_mode<synchronous>, transform_indices = @transform_6, window_bounds = array<i64: 128, 128>}, {pipeline_mode = #tpu.pipeline_mode<synchronous>, transform_indices = @transform_7, window_bounds = array<i64: 1, 128>}, {transform_indices = @transform_8, window_bounds = array<i64: 1, 1>}]} {
    %c0_i32 = arith.constant 0 : i32
    %0 = arith.cmpi eq, %arg0, %c0_i32 : i32
    %c0_i32_0 = arith.constant 0 : i32
    %1 = arith.cmpi eq, %arg1, %c0_i32_0 : i32
    %2 = arith.andi %0, %1 : i1
    %3 = arith.extui %2 : i1 to i32
    %c0_i32_1 = arith.constant 0 : i32
    %4 = arith.cmpi ne, %3, %c0_i32_1 : i32
    scf.if %4 {
      %cst = arith.constant 0.000000e+00 : f32
      %11 = vector.broadcast %cst : f32 to vector<1x128xf32>
      %c0 = arith.constant 0 : index
      %c0_5 = arith.constant 0 : index
      %12 = vector.load %arg11[%c0, %c0_5] : memref<1x128xf32, #tpu.memory_space<vmem>>, vector<1x128xf32>
      tpu.vector_store %arg11[%c0, %c0_5], %11 {strides = array<i32>} : memref<1x128xf32, #tpu.memory_space<vmem>>, vector<1x128xf32>,
      %cst_6 = arith.constant 0.000000e+00 : f32
      %13 = vector.broadcast %cst_6 : f32 to vector<1x128xf32>
      %c0_7 = arith.constant 0 : index
      %c0_8 = arith.constant 0 : index
      %14 = vector.load %arg12[%c0_7, %c0_8] : memref<1x128xf32, #tpu.memory_space<vmem>>, vector<1x128xf32>
      tpu.vector_store %arg12[%c0_7, %c0_8], %13 {strides = array<i32>} : memref<1x128xf32, #tpu.memory_space<vmem>>, vector<1x128xf32>,
      %cst_9 = arith.constant 0.000000e+00 : f32
      %15 = vector.broadcast %cst_9 : f32 to vector<1x128xf32>
      %c0_10 = arith.constant 0 : index
      %c0_11 = arith.constant 0 : index
      %16 = vector.load %arg13[%c0_10, %c0_11] : memref<1x128xf32, #tpu.memory_space<vmem>>, vector<1x128xf32>
      tpu.vector_store %arg13[%c0_10, %c0_11], %15 {strides = array<i32>} : memref<1x128xf32, #tpu.memory_space<vmem>>, vector<1x128xf32>,
    } else {
    }
    %c0_i32_2 = arith.constant 0 : i32
    %5 = arith.cmpi eq, %arg0, %c0_i32_2 : i32
    %6 = arith.extui %5 : i1 to i32
    %c0_i32_3 = arith.constant 0 : i32
    %7 = arith.cmpi ne, %6, %c0_i32_3 : i32
    scf.if %7 {
      %c0 = arith.constant 0 : index
      %c0_5 = arith.constant 0 : index
      %11 = vector.load %arg2[%c0, %c0_5] : memref<8x128xf32, #tpu.memory_space<vmem>>, vector<8x128xf32>
      %c0_6 = arith.constant 0 : index
      %c0_7 = arith.constant 0 : index
      %12 = vector.load %arg4[%c0_6, %c0_7] : memref<128x128xf32, #tpu.memory_space<vmem>>, vector<128x128xf32>
      %cst = arith.constant dense<0.000000e+00> : vector<8x128xf32>
      %13 = tpu.matmul %11, %12, %cst {dimension_numbers = #tpu.dot_dimension_numbers<[1], [0], [0], [1], [0, 0, 1, 1], [], []>} : vector<8x128xf32>, vector<128x128xf32>, vector<8x128xf32> -> vector<8x128xf32>
      %c0_8 = arith.constant 0 : index
      %c0_9 = arith.constant 0 : index
      %14 = vector.load %arg5[%c0_8, %c0_9] : memref<1x128xf32, #tpu.memory_space<vmem>>, vector<1x128xf32>
      %15 = vector.broadcast %14 : vector<1x128xf32> to vector<8x128xf32>
      %16 = arith.addf %13, %15 : vector<8x128xf32>
      %17 = arith.index_cast %arg1 : i32 to index
      %c0_10 = arith.constant 0 : index
      %c0_11 = arith.constant 0 : index
      %18 = vector.load %arg14[%17, %c0_10, %c0_11] : memref<1x8x128xf32, #tpu.memory_space<vmem>>, vector<1x8x128xf32>
      %19 = vector.shape_cast %18 : vector<1x8x128xf32> to vector<8x128xf32>
      %20 = vector.shape_cast %16 : vector<8x128xf32> to vector<1x8x128xf32>
      tpu.vector_store %arg14[%17, %c0_10, %c0_11], %20 {strides = array<i32>} : memref<1x8x128xf32, #tpu.memory_space<vmem>>, vector<1x8x128xf32>,
      %c0_12 = arith.constant 0 : index
      %c0_13 = arith.constant 0 : index
      %21 = vector.load %arg11[%c0_12, %c0_13] : memref<1x128xf32, #tpu.memory_space<vmem>>, vector<1x128xf32>
      %cst_14 = arith.constant dense<0.000000e+00> : vector<128xf32>
      %22 = vector.multi_reduction <add>, %16, %cst_14 [0] : vector<8x128xf32> to vector<128xf32>
      %23 = vector.shape_cast %22 : vector<128xf32> to vector<1x128xf32>
      %24 = arith.addf %21, %23 : vector<1x128xf32>
      %c0_15 = arith.constant 0 : index
      %c0_16 = arith.constant 0 : index
      %25 = vector.load %arg11[%c0_15, %c0_16] : memref<1x128xf32, #tpu.memory_space<vmem>>, vector<1x128xf32>
      tpu.vector_store %arg11[%c0_15, %c0_16], %24 {strides = array<i32>} : memref<1x128xf32, #tpu.memory_space<vmem>>, vector<1x128xf32>,
      %c0_17 = arith.constant 0 : index
      %c0_18 = arith.constant 0 : index
      %26 = vector.load %arg12[%c0_17, %c0_18] : memref<1x128xf32, #tpu.memory_space<vmem>>, vector<1x128xf32>
      %27 = arith.mulf %16, %16 : vector<8x128xf32>
      %cst_19 = arith.constant dense<0.000000e+00> : vector<128xf32>
      %28 = vector.multi_reduction <add>, %27, %cst_19 [0] : vector<8x128xf32> to vector<128xf32>
      %29 = vector.shape_cast %28 : vector<128xf32> to vector<1x128xf32>
      %30 = arith.addf %26, %29 : vector<1x128xf32>
      %c0_20 = arith.constant 0 : index
      %c0_21 = arith.constant 0 : index
      %31 = vector.load %arg12[%c0_20, %c0_21] : memref<1x128xf32, #tpu.memory_space<vmem>>, vector<1x128xf32>
      tpu.vector_store %arg12[%c0_20, %c0_21], %30 {strides = array<i32>} : memref<1x128xf32, #tpu.memory_space<vmem>>, vector<1x128xf32>,
    } else {
    }
    %c1_i32 = arith.constant 1 : i32
    %8 = arith.cmpi eq, %arg0, %c1_i32 : i32
    %9 = arith.extui %8 : i1 to i32
    %c0_i32_4 = arith.constant 0 : i32
    %10 = arith.cmpi ne, %9, %c0_i32_4 : i32
    scf.if %10 {
      %11 = arith.index_cast %arg1 : i32 to index
      %c0 = arith.constant 0 : index
      %c0_5 = arith.constant 0 : index
      %12 = vector.load %arg14[%11, %c0, %c0_5] : memref<1x8x128xf32, #tpu.memory_space<vmem>>, vector<1x8x128xf32>
      %13 = vector.shape_cast %12 : vector<1x8x128xf32> to vector<8x128xf32>
      %c0_6 = arith.constant 0 : index
      %c0_7 = arith.constant 0 : index
      %14 = vector.load %arg11[%c0_6, %c0_7] : memref<1x128xf32, #tpu.memory_space<vmem>>, vector<1x128xf32>
      %cst = arith.constant 1.250000e-01 : f32
      %15 = vector.broadcast %cst : f32 to vector<1x128xf32>
      %16 = arith.mulf %14, %15 : vector<1x128xf32>
      %c0_8 = arith.constant 0 : index
      %c0_9 = arith.constant 0 : index
      %17 = vector.load %arg12[%c0_8, %c0_9] : memref<1x128xf32, #tpu.memory_space<vmem>>, vector<1x128xf32>
      %cst_10 = arith.constant 1.250000e-01 : f32
      %18 = vector.broadcast %cst_10 : f32 to vector<1x128xf32>
      %19 = arith.mulf %17, %18 : vector<1x128xf32>
      %20 = arith.mulf %16, %16 : vector<1x128xf32>
      %21 = arith.subf %19, %20 : vector<1x128xf32>
      %cst_11 = arith.constant 0.000000e+00 : f32
      %22 = vector.broadcast %cst_11 : f32 to vector<1x128xf32>
      %23 = arith.maximumf %21, %22 : vector<1x128xf32>
      %cst_12 = arith.constant 9.99999974E-6 : f32
      %24 = vector.broadcast %cst_12 : f32 to vector<1x128xf32>
      %25 = arith.addf %23, %24 : vector<1x128xf32>
      %26 = math.rsqrt %25 : vector<1x128xf32>
      %c0_13 = arith.constant 0 : index
      %c0_14 = arith.constant 0 : index
      %27 = vector.load %arg6[%c0_13, %c0_14] : memref<1x128xf32, #tpu.memory_space<vmem>>, vector<1x128xf32>
      %28 = arith.mulf %26, %27 : vector<1x128xf32>
      %c0_15 = arith.constant 0 : index
      %c0_16 = arith.constant 0 : index
      %29 = vector.load %arg7[%c0_15, %c0_16] : memref<1x128xf32, #tpu.memory_space<vmem>>, vector<1x128xf32>
      %30 = vector.broadcast %16 : vector<1x128xf32> to vector<8x128xf32>
      %31 = arith.subf %13, %30 : vector<8x128xf32>
      %32 = vector.broadcast %28 : vector<1x128xf32> to vector<8x128xf32>
      %33 = arith.mulf %31, %32 : vector<8x128xf32>
      %34 = vector.broadcast %29 : vector<1x128xf32> to vector<8x128xf32>
      %35 = arith.addf %33, %34 : vector<8x128xf32>
      %cst_17 = arith.constant 0.000000e+00 : f32
      %36 = vector.broadcast %cst_17 : f32 to vector<8x128xf32>
      %37 = arith.maximumf %35, %36 : vector<8x128xf32>
      %c0_18 = arith.constant 0 : index
      %c0_19 = arith.constant 0 : index
      %38 = vector.load %arg8[%c0_18, %c0_19] : memref<128x128xf32, #tpu.memory_space<vmem>>, vector<128x128xf32>
      %cst_20 = arith.constant dense<0.000000e+00> : vector<8x128xf32>
      %39 = tpu.matmul %37, %38, %cst_20 {dimension_numbers = #tpu.dot_dimension_numbers<[1], [0], [0], [1], [0, 0, 1, 1], [], []>} : vector<8x128xf32>, vector<128x128xf32>, vector<8x128xf32> -> vector<8x128xf32>
      %c0_21 = arith.constant 0 : index
      %c0_22 = arith.constant 0 : index
      %40 = vector.load %arg9[%c0_21, %c0_22] : memref<1x128xf32, #tpu.memory_space<vmem>>, vector<1x128xf32>
      %41 = vector.broadcast %40 : vector<1x128xf32> to vector<8x128xf32>
      %42 = arith.addf %39, %41 : vector<8x128xf32>
      %c0_23 = arith.constant 0 : index
      %c0_24 = arith.constant 0 : index
      %43 = vector.load %arg3[%c0_23, %c0_24] : memref<8x128xf32, #tpu.memory_space<vmem>>, vector<8x128xf32>
      %44 = arith.subf %42, %43 : vector<8x128xf32>
      %45 = arith.mulf %44, %44 : vector<8x128xf32>
      %c0_25 = arith.constant 0 : index
      %c0_26 = arith.constant 0 : index
      %46 = vector.load %arg13[%c0_25, %c0_26] : memref<1x128xf32, #tpu.memory_space<vmem>>, vector<1x128xf32>
      %cst_27 = arith.constant dense<0.000000e+00> : vector<128xf32>
      %47 = vector.multi_reduction <add>, %45, %cst_27 [0] : vector<8x128xf32> to vector<128xf32>
      %48 = vector.shape_cast %47 : vector<128xf32> to vector<1x128xf32>
      %49 = arith.addf %46, %48 : vector<1x128xf32>
      %c0_28 = arith.constant 0 : index
      %c0_29 = arith.constant 0 : index
      %50 = vector.load %arg13[%c0_28, %c0_29] : memref<1x128xf32, #tpu.memory_space<vmem>>, vector<1x128xf32>
      tpu.vector_store %arg13[%c0_28, %c0_29], %49 {strides = array<i32>} : memref<1x128xf32, #tpu.memory_space<vmem>>, vector<1x128xf32>,
      %c0_i32_30 = arith.constant 0 : i32
      %51 = arith.cmpi eq, %arg1, %c0_i32_30 : i32
      %52 = arith.extui %51 : i1 to i32
      %c0_i32_31 = arith.constant 0 : i32
      %53 = arith.cmpi ne, %52, %c0_i32_31 : i32
      scf.if %53 {
        %c0_32 = arith.constant 0 : index
        %c0_33 = arith.constant 0 : index
        %54 = vector.load %arg13[%c0_32, %c0_33] : memref<1x128xf32, #tpu.memory_space<vmem>>, vector<1x128xf32>
        %55 = vector.shape_cast %54 : vector<1x128xf32> to vector<1x1x128xf32>
        %cst_34 = arith.constant dense<0.000000e+00> : vector<1xf32>
        %56 = vector.multi_reduction <add>, %55, %cst_34 [1, 2] : vector<1x1x128xf32> to vector<1xf32>
        %57 = vector.shape_cast %56 : vector<1xf32> to vector<1x1x1xf32>
        %58 = vector.extract %57[0, 0, 0] : f32 from vector<1x1x1xf32>
        %cst_35 = arith.constant 3.906250e-03 : f32
        %59 = arith.mulf %58, %cst_35 : f32
        %c0_36 = arith.constant 0 : index
        %c0_37 = arith.constant 0 : index
        %60 = memref.load %arg10[%c0_36, %c0_37] : memref<1x1xf32, #tpu.memory_space<smem>>
        memref.store %59, %arg10[%c0_36, %c0_37] : memref<1x1xf32, #tpu.memory_space<smem>>
      } else {
      }
    } else {
    }
    return
  }
  func.func @transform_0(%arg0: i32, %arg1: i32) -> (i32, i32) {
    %c1_i32 = arith.constant 1 : i32
    %0 = arith.subi %c1_i32, %arg0 : i32
    %1 = arith.muli %arg1, %0 : i32
    %c0_i32 = arith.constant 0 : i32
    %c0_i32_0 = arith.constant 0 : i32
    return %1, %c0_i32 : i32, i32
  }
  func.func @transform_1(%arg0: i32, %arg1: i32) -> (i32, i32) {
    %0 = arith.muli %arg1, %arg0 : i32
    %c0_i32 = arith.constant 0 : i32
    %c0_i32_0 = arith.constant 0 : i32
    return %0, %c0_i32 : i32, i32
  }
  func.func @transform_2(%arg0: i32, %arg1: i32) -> (i32, i32) {
    %c0_i32 = arith.constant 0 : i32
    %c0_i32_0 = arith.constant 0 : i32
    %c0_i32_1 = arith.constant 0 : i32
    return %c0_i32, %c0_i32_0 : i32, i32
  }
  func.func @transform_3(%arg0: i32, %arg1: i32) -> (i32, i32) {
    %c0_i32 = arith.constant 0 : i32
    %c0_i32_0 = arith.constant 0 : i32
    %c0_i32_1 = arith.constant 0 : i32
    return %c0_i32, %c0_i32_0 : i32, i32
  }
  func.func @transform_4(%arg0: i32, %arg1: i32) -> (i32, i32) {
    %c0_i32 = arith.constant 0 : i32
    %c0_i32_0 = arith.constant 0 : i32
    %c0_i32_1 = arith.constant 0 : i32
    return %c0_i32, %c0_i32_0 : i32, i32
  }
  func.func @transform_5(%arg0: i32, %arg1: i32) -> (i32, i32) {
    %c0_i32 = arith.constant 0 : i32
    %c0_i32_0 = arith.constant 0 : i32
    %c0_i32_1 = arith.constant 0 : i32
    return %c0_i32, %c0_i32_0 : i32, i32
  }
  func.func @transform_6(%arg0: i32, %arg1: i32) -> (i32, i32) {
    %c0_i32 = arith.constant 0 : i32
    %c0_i32_0 = arith.constant 0 : i32
    %c0_i32_1 = arith.constant 0 : i32
    return %c0_i32, %c0_i32_0 : i32, i32
  }
  func.func @transform_7(%arg0: i32, %arg1: i32) -> (i32, i32) {
    %c0_i32 = arith.constant 0 : i32
    %c0_i32_0 = arith.constant 0 : i32
    %c0_i32_1 = arith.constant 0 : i32
    return %c0_i32, %c0_i32_0 : i32, i32
  }
  func.func @transform_8(%arg0: i32, %arg1: i32) -> (i32, i32) {
    %c0_i32 = arith.constant 0 : i32
    %c0_i32_0 = arith.constant 0 : i32
    %c0_i32_1 = arith.constant 0 : i32
    return %c0_i32, %c0_i32_0 : i32, i32
  }
}

module attributes {stable_mosaic.version = 11 : i64} {
  func.func @_autoencoder_loss_kernel(%arg0: i32, %arg1: i32, %arg2: memref<8x128xf32, #tpu.memory_space<vmem>>, %arg3: memref<8x128xf32, #tpu.memory_space<vmem>>, %arg4: memref<128x128xf32, #tpu.memory_space<vmem>>, %arg5: memref<1x128xf32, #tpu.memory_space<vmem>>, %arg6: memref<1x128xf32, #tpu.memory_space<vmem>>, %arg7: memref<1x128xf32, #tpu.memory_space<vmem>>, %arg8: memref<128x128xf32, #tpu.memory_space<vmem>>, %arg9: memref<1x128xf32, #tpu.memory_space<vmem>>, %arg10: memref<1x1xf32, #tpu.memory_space<smem>>, %arg11: memref<1x128xf32, #tpu.memory_space<vmem>>, %arg12: memref<1x128xf32, #tpu.memory_space<vmem>>, %arg13: memref<1x128xf32, #tpu.memory_space<vmem>>, %arg14: memref<1x8x128xf32, #tpu.memory_space<vmem>>) attributes {dimension_semantics = [#tpu.dimension_semantics<arbitrary>, #tpu.dimension_semantics<arbitrary>], iteration_bounds = array<i64: 2, 1>, scalar_prefetch = 0 : i64, scratch_operands = 4 : i64, tpu.core_type = #tpu.core_type<tc>, window_params = [{transform_indices = @transform_0, window_bounds = array<i64: 8, 128>}, {transform_indices = @transform_1, window_bounds = array<i64: 8, 128>}, {pipeline_mode = #tpu.pipeline_mode<synchronous>, transform_indices = @transform_2, window_bounds = array<i64: 128, 128>}, {pipeline_mode = #tpu.pipeline_mode<synchronous>, transform_indices = @transform_3, window_bounds = array<i64: 1, 128>}, {pipeline_mode = #tpu.pipeline_mode<synchronous>, transform_indices = @transform_4, window_bounds = array<i64: 1, 128>}, {pipeline_mode = #tpu.pipeline_mode<synchronous>, transform_indices = @transform_5, window_bounds = array<i64: 1, 128>}, {pipeline_mode = #tpu.pipeline_mode<synchronous>, transform_indices = @transform_6, window_bounds = array<i64: 128, 128>}, {pipeline_mode = #tpu.pipeline_mode<synchronous>, transform_indices = @transform_7, window_bounds = array<i64: 1, 128>}, {transform_indices = @transform_8, window_bounds = array<i64: 1, 1>}]} {
    %c0_i32 = arith.constant 0 : i32
    %0 = arith.cmpi eq, %arg0, %c0_i32 : i32
    %c0_i32_0 = arith.constant 0 : i32
    %1 = arith.cmpi eq, %arg1, %c0_i32_0 : i32
    %2 = arith.andi %0, %1 : i1
    %3 = arith.extui %2 : i1 to i32
    %c0_i32_1 = arith.constant 0 : i32
    %4 = arith.cmpi ne, %3, %c0_i32_1 : i32
    scf.if %4 {
      %cst = arith.constant 0.000000e+00 : f32
      %11 = vector.broadcast %cst : f32 to vector<1x128xf32>
      %c0 = arith.constant 0 : index
      %c0_5 = arith.constant 0 : index
      %12 = vector.load %arg11[%c0, %c0_5] : memref<1x128xf32, #tpu.memory_space<vmem>>, vector<1x128xf32>
      tpu.vector_store %arg11[%c0, %c0_5], %11 {strides = array<i32>} : memref<1x128xf32, #tpu.memory_space<vmem>>, vector<1x128xf32>,
      %cst_6 = arith.constant 0.000000e+00 : f32
      %13 = vector.broadcast %cst_6 : f32 to vector<1x128xf32>
      %c0_7 = arith.constant 0 : index
      %c0_8 = arith.constant 0 : index
      %14 = vector.load %arg12[%c0_7, %c0_8] : memref<1x128xf32, #tpu.memory_space<vmem>>, vector<1x128xf32>
      tpu.vector_store %arg12[%c0_7, %c0_8], %13 {strides = array<i32>} : memref<1x128xf32, #tpu.memory_space<vmem>>, vector<1x128xf32>,
      %cst_9 = arith.constant 0.000000e+00 : f32
      %15 = vector.broadcast %cst_9 : f32 to vector<1x128xf32>
      %c0_10 = arith.constant 0 : index
      %c0_11 = arith.constant 0 : index
      %16 = vector.load %arg13[%c0_10, %c0_11] : memref<1x128xf32, #tpu.memory_space<vmem>>, vector<1x128xf32>
      tpu.vector_store %arg13[%c0_10, %c0_11], %15 {strides = array<i32>} : memref<1x128xf32, #tpu.memory_space<vmem>>, vector<1x128xf32>,
    } else {
    }
    %c0_i32_2 = arith.constant 0 : i32
    %5 = arith.cmpi eq, %arg0, %c0_i32_2 : i32
    %6 = arith.extui %5 : i1 to i32
    %c0_i32_3 = arith.constant 0 : i32
    %7 = arith.cmpi ne, %6, %c0_i32_3 : i32
    scf.if %7 {
      %c0 = arith.constant 0 : index
      %c0_5 = arith.constant 0 : index
      %11 = vector.load %arg2[%c0, %c0_5] : memref<8x128xf32, #tpu.memory_space<vmem>>, vector<8x128xf32>
      %c0_6 = arith.constant 0 : index
      %c0_7 = arith.constant 0 : index
      %12 = vector.load %arg4[%c0_6, %c0_7] : memref<128x128xf32, #tpu.memory_space<vmem>>, vector<128x128xf32>
      %cst = arith.constant dense<0.000000e+00> : vector<8x128xf32>
      %13 = tpu.matmul %11, %12, %cst {dimension_numbers = #tpu.dot_dimension_numbers<[1], [0], [0], [1], [0, 0, 1, 1], [], []>} : vector<8x128xf32>, vector<128x128xf32>, vector<8x128xf32> -> vector<8x128xf32>
      %c0_8 = arith.constant 0 : index
      %c0_9 = arith.constant 0 : index
      %14 = vector.load %arg5[%c0_8, %c0_9] : memref<1x128xf32, #tpu.memory_space<vmem>>, vector<1x128xf32>
      %15 = vector.broadcast %14 : vector<1x128xf32> to vector<8x128xf32>
      %16 = arith.addf %13, %15 : vector<8x128xf32>
      %17 = arith.index_cast %arg1 : i32 to index
      %c0_10 = arith.constant 0 : index
      %c0_11 = arith.constant 0 : index
      %18 = vector.load %arg14[%17, %c0_10, %c0_11] : memref<1x8x128xf32, #tpu.memory_space<vmem>>, vector<1x8x128xf32>
      %19 = vector.shape_cast %18 : vector<1x8x128xf32> to vector<8x128xf32>
      %20 = vector.shape_cast %16 : vector<8x128xf32> to vector<1x8x128xf32>
      tpu.vector_store %arg14[%17, %c0_10, %c0_11], %20 {strides = array<i32>} : memref<1x8x128xf32, #tpu.memory_space<vmem>>, vector<1x8x128xf32>,
      %c0_12 = arith.constant 0 : index
      %c0_13 = arith.constant 0 : index
      %21 = vector.load %arg11[%c0_12, %c0_13] : memref<1x128xf32, #tpu.memory_space<vmem>>, vector<1x128xf32>
      %cst_14 = arith.constant dense<0.000000e+00> : vector<128xf32>
      %22 = vector.multi_reduction <add>, %16, %cst_14 [0] : vector<8x128xf32> to vector<128xf32>
      %23 = vector.shape_cast %22 : vector<128xf32> to vector<1x128xf32>
      %24 = arith.addf %21, %23 : vector<1x128xf32>
      %c0_15 = arith.constant 0 : index
      %c0_16 = arith.constant 0 : index
      %25 = vector.load %arg11[%c0_15, %c0_16] : memref<1x128xf32, #tpu.memory_space<vmem>>, vector<1x128xf32>
      tpu.vector_store %arg11[%c0_15, %c0_16], %24 {strides = array<i32>} : memref<1x128xf32, #tpu.memory_space<vmem>>, vector<1x128xf32>,
      %c0_17 = arith.constant 0 : index
      %c0_18 = arith.constant 0 : index
      %26 = vector.load %arg12[%c0_17, %c0_18] : memref<1x128xf32, #tpu.memory_space<vmem>>, vector<1x128xf32>
      %27 = arith.mulf %16, %16 : vector<8x128xf32>
      %cst_19 = arith.constant dense<0.000000e+00> : vector<128xf32>
      %28 = vector.multi_reduction <add>, %27, %cst_19 [0] : vector<8x128xf32> to vector<128xf32>
      %29 = vector.shape_cast %28 : vector<128xf32> to vector<1x128xf32>
      %30 = arith.addf %26, %29 : vector<1x128xf32>
      %c0_20 = arith.constant 0 : index
      %c0_21 = arith.constant 0 : index
      %31 = vector.load %arg12[%c0_20, %c0_21] : memref<1x128xf32, #tpu.memory_space<vmem>>, vector<1x128xf32>
      tpu.vector_store %arg12[%c0_20, %c0_21], %30 {strides = array<i32>} : memref<1x128xf32, #tpu.memory_space<vmem>>, vector<1x128xf32>,
    } else {
    }
    %c1_i32 = arith.constant 1 : i32
    %8 = arith.cmpi eq, %arg0, %c1_i32 : i32
    %9 = arith.extui %8 : i1 to i32
    %c0_i32_4 = arith.constant 0 : i32
    %10 = arith.cmpi ne, %9, %c0_i32_4 : i32
    scf.if %10 {
      %11 = arith.index_cast %arg1 : i32 to index
      %c0 = arith.constant 0 : index
      %c0_5 = arith.constant 0 : index
      %12 = vector.load %arg14[%11, %c0, %c0_5] : memref<1x8x128xf32, #tpu.memory_space<vmem>>, vector<1x8x128xf32>
      %13 = vector.shape_cast %12 : vector<1x8x128xf32> to vector<8x128xf32>
      %c0_6 = arith.constant 0 : index
      %c0_7 = arith.constant 0 : index
      %14 = vector.load %arg11[%c0_6, %c0_7] : memref<1x128xf32, #tpu.memory_space<vmem>>, vector<1x128xf32>
      %cst = arith.constant 1.250000e-01 : f32
      %15 = vector.broadcast %cst : f32 to vector<1x128xf32>
      %16 = arith.mulf %14, %15 : vector<1x128xf32>
      %c0_8 = arith.constant 0 : index
      %c0_9 = arith.constant 0 : index
      %17 = vector.load %arg12[%c0_8, %c0_9] : memref<1x128xf32, #tpu.memory_space<vmem>>, vector<1x128xf32>
      %cst_10 = arith.constant 1.250000e-01 : f32
      %18 = vector.broadcast %cst_10 : f32 to vector<1x128xf32>
      %19 = arith.mulf %17, %18 : vector<1x128xf32>
      %20 = arith.mulf %16, %16 : vector<1x128xf32>
      %21 = arith.subf %19, %20 : vector<1x128xf32>
      %cst_11 = arith.constant 0.000000e+00 : f32
      %22 = vector.broadcast %cst_11 : f32 to vector<1x128xf32>
      %23 = arith.maximumf %21, %22 : vector<1x128xf32>
      %cst_12 = arith.constant 9.99999974E-6 : f32
      %24 = vector.broadcast %cst_12 : f32 to vector<1x128xf32>
      %25 = arith.addf %23, %24 : vector<1x128xf32>
      %26 = math.rsqrt %25 : vector<1x128xf32>
      %c0_13 = arith.constant 0 : index
      %c0_14 = arith.constant 0 : index
      %27 = vector.load %arg6[%c0_13, %c0_14] : memref<1x128xf32, #tpu.memory_space<vmem>>, vector<1x128xf32>
      %28 = arith.mulf %26, %27 : vector<1x128xf32>
      %c0_15 = arith.constant 0 : index
      %c0_16 = arith.constant 0 : index
      %29 = vector.load %arg7[%c0_15, %c0_16] : memref<1x128xf32, #tpu.memory_space<vmem>>, vector<1x128xf32>
      %30 = vector.broadcast %16 : vector<1x128xf32> to vector<8x128xf32>
      %31 = arith.subf %13, %30 : vector<8x128xf32>
      %32 = vector.broadcast %28 : vector<1x128xf32> to vector<8x128xf32>
      %33 = arith.mulf %31, %32 : vector<8x128xf32>
      %34 = vector.broadcast %29 : vector<1x128xf32> to vector<8x128xf32>
      %35 = arith.addf %33, %34 : vector<8x128xf32>
      %cst_17 = arith.constant 0.000000e+00 : f32
      %36 = vector.broadcast %cst_17 : f32 to vector<8x128xf32>
      %37 = arith.maximumf %35, %36 : vector<8x128xf32>
      %c0_18 = arith.constant 0 : index
      %c0_19 = arith.constant 0 : index
      %38 = vector.load %arg8[%c0_18, %c0_19] : memref<128x128xf32, #tpu.memory_space<vmem>>, vector<128x128xf32>
      %cst_20 = arith.constant dense<0.000000e+00> : vector<8x128xf32>
      %39 = tpu.matmul %37, %38, %cst_20 {dimension_numbers = #tpu.dot_dimension_numbers<[1], [0], [0], [1], [0, 0, 1, 1], [], []>} : vector<8x128xf32>, vector<128x128xf32>, vector<8x128xf32> -> vector<8x128xf32>
      %c0_21 = arith.constant 0 : index
      %c0_22 = arith.constant 0 : index
      %40 = vector.load %arg9[%c0_21, %c0_22] : memref<1x128xf32, #tpu.memory_space<vmem>>, vector<1x128xf32>
      %41 = vector.broadcast %40 : vector<1x128xf32> to vector<8x128xf32>
      %42 = arith.addf %39, %41 : vector<8x128xf32>
      %c0_23 = arith.constant 0 : index
      %c0_24 = arith.constant 0 : index
      %43 = vector.load %arg3[%c0_23, %c0_24] : memref<8x128xf32, #tpu.memory_space<vmem>>, vector<8x128xf32>
      %44 = arith.subf %42, %43 : vector<8x128xf32>
      %45 = arith.mulf %44, %44 : vector<8x128xf32>
      %c0_25 = arith.constant 0 : index
      %c0_26 = arith.constant 0 : index
      %46 = vector.load %arg13[%c0_25, %c0_26] : memref<1x128xf32, #tpu.memory_space<vmem>>, vector<1x128xf32>
      %cst_27 = arith.constant dense<0.000000e+00> : vector<128xf32>
      %47 = vector.multi_reduction <add>, %45, %cst_27 [0] : vector<8x128xf32> to vector<128xf32>
      %48 = vector.shape_cast %47 : vector<128xf32> to vector<1x128xf32>
      %49 = arith.addf %46, %48 : vector<1x128xf32>
      %c0_28 = arith.constant 0 : index
      %c0_29 = arith.constant 0 : index
      %50 = vector.load %arg13[%c0_28, %c0_29] : memref<1x128xf32, #tpu.memory_space<vmem>>, vector<1x128xf32>
      tpu.vector_store %arg13[%c0_28, %c0_29], %49 {strides = array<i32>} : memref<1x128xf32, #tpu.memory_space<vmem>>, vector<1x128xf32>,
      %c0_i32_30 = arith.constant 0 : i32
      %51 = arith.cmpi eq, %arg1, %c0_i32_30 : i32
      %52 = arith.extui %51 : i1 to i32
      %c0_i32_31 = arith.constant 0 : i32
      %53 = arith.cmpi ne, %52, %c0_i32_31 : i32
      scf.if %53 {
        %c0_32 = arith.constant 0 : index
        %c0_33 = arith.constant 0 : index
        %54 = vector.load %arg13[%c0_32, %c0_33] : memref<1x128xf32, #tpu.memory_space<vmem>>, vector<1x128xf32>
        %55 = vector.shape_cast %54 : vector<1x128xf32> to vector<1x1x128xf32>
        %cst_34 = arith.constant dense<0.000000e+00> : vector<1xf32>
        %56 = vector.multi_reduction <add>, %55, %cst_34 [1, 2] : vector<1x1x128xf32> to vector<1xf32>
        %57 = vector.shape_cast %56 : vector<1xf32> to vector<1x1x1xf32>
        %58 = vector.extract %57[0, 0, 0] : f32 from vector<1x1x1xf32>
        %cst_35 = arith.constant 3.906250e-03 : f32
        %59 = arith.mulf %58, %cst_35 : f32
        %c0_36 = arith.constant 0 : index
        %c0_37 = arith.constant 0 : index
        %60 = memref.load %arg10[%c0_36, %c0_37] : memref<1x1xf32, #tpu.memory_space<smem>>
        memref.store %59, %arg10[%c0_36, %c0_37] : memref<1x1xf32, #tpu.memory_space<smem>>
      } else {
      }
    } else {
    }
    return
  }
  func.func @transform_0(%arg0: i32, %arg1: i32) -> (i32, i32) {
    %c1_i32 = arith.constant 1 : i32
    %0 = arith.subi %c1_i32, %arg0 : i32
    %1 = arith.muli %arg1, %0 : i32
    %c0_i32 = arith.constant 0 : i32
    %c0_i32_0 = arith.constant 0 : i32
    return %1, %c0_i32 : i32, i32
  }
  func.func @transform_1(%arg0: i32, %arg1: i32) -> (i32, i32) {
    %0 = arith.muli %arg1, %arg0 : i32
    %c0_i32 = arith.constant 0 : i32
    %c0_i32_0 = arith.constant 0 : i32
    return %0, %c0_i32 : i32, i32
  }
  func.func @transform_2(%arg0: i32, %arg1: i32) -> (i32, i32) {
    %c0_i32 = arith.constant 0 : i32
    %c0_i32_0 = arith.constant 0 : i32
    %c0_i32_1 = arith.constant 0 : i32
    return %c0_i32, %c0_i32_0 : i32, i32
  }
  func.func @transform_3(%arg0: i32, %arg1: i32) -> (i32, i32) {
    %c0_i32 = arith.constant 0 : i32
    %c0_i32_0 = arith.constant 0 : i32
    %c0_i32_1 = arith.constant 0 : i32
    return %c0_i32, %c0_i32_0 : i32, i32
  }
  func.func @transform_4(%arg0: i32, %arg1: i32) -> (i32, i32) {
    %c0_i32 = arith.constant 0 : i32
    %c0_i32_0 = arith.constant 0 : i32
    %c0_i32_1 = arith.constant 0 : i32
    return %c0_i32, %c0_i32_0 : i32, i32
  }
  func.func @transform_5(%arg0: i32, %arg1: i32) -> (i32, i32) {
    %c0_i32 = arith.constant 0 : i32
    %c0_i32_0 = arith.constant 0 : i32
    %c0_i32_1 = arith.constant 0 : i32
    return %c0_i32, %c0_i32_0 : i32, i32
  }
  func.func @transform_6(%arg0: i32, %arg1: i32) -> (i32, i32) {
    %c0_i32 = arith.constant 0 : i32
    %c0_i32_0 = arith.constant 0 : i32
    %c0_i32_1 = arith.constant 0 : i32
    return %c0_i32, %c0_i32_0 : i32, i32
  }
  func.func @transform_7(%arg0: i32, %arg1: i32) -> (i32, i32) {
    %c0_i32 = arith.constant 0 : i32
    %c0_i32_0 = arith.constant 0 : i32
    %c0_i32_1 = arith.constant 0 : i32
    return %c0_i32, %c0_i32_0 : i32, i32
  }
  func.func @transform_8(%arg0: i32, %arg1: i32) -> (i32, i32) {
    %c0_i32 = arith.constant 0 : i32
    %c0_i32_0 = arith.constant 0 : i32
    %c0_i32_1 = arith.constant 0 : i32
    return %c0_i32, %c0_i32_0 : i32, i32
  }
}

</mosaic_0001>

<bundles_post_ra>
// kernel: tpu_custom_call.1
= control target key start
LH: loop header
LB: loop body
LE: loop exit
PB: predicated region body
PF: predicated region fallthrough
CT: control target
= control target key end

     0   :  { %13 = vsyncpa [#allocation7], 0  ;;  %s1374_s0 = inlined_call_operand.hbm [shape: f32[8,128], index: 0, kind: input, shape index: {}]   ;;  %s1375_s1 = inlined_call_operand.hbm [shape: f32[8,128], index: 1, kind: input, shape index: {}]   ;;  %s1376_s2 = inlined_call_operand.hbm [shape: f32[128,128], index: 2, kind: input, shape index: {}]   ;;  %s1377_s3 = inlined_call_operand.vmem [shape: f32[1,128], index: 3, kind: input, shape index: {}]   ;;  %s1378_s4 = inlined_call_operand.vmem [shape: f32[1,128], index: 4, kind: input, shape index: {}]   ;;  %s1379_s5 = inlined_call_operand.vmem [shape: f32[1,128], index: 5, kind: input, shape index: {}]   ;;  %s1380_s6 = inlined_call_operand.hbm [shape: f32[128,128], index: 6, kind: input, shape index: {}]   ;;  %s1381_s7 = inlined_call_operand.vmem [shape: f32[1,128], index: 7, kind: input, shape index: {}]   ;;  %s1382_s8 = inlined_call_operand.hbm [shape: f32[1,1], index: 8, kind: output, shape index: {}]  }
   0x1   :  { %15 = vsyncpa [#allocation7 + $0x1], 0 }
   0x2   :  { %16 = vsyncpa [#allocation10], 0 }
   0x3   :  { %18 = vsyncpa [#allocation10 + $0x1], 0 }
   0x4   :  { %19 = vsyncpa [#allocation13], 0 }
   0x5   :  { %20 = vsyncpa [#allocation8], 0  ;;  %s1229_s27 = smov 0   ;;  %s1231_s28 = smov 0  }
   0x6   :  { %s1233_s29 = smov 0  }
   0x7 LB: > { %s1245_s30 = sadd.s32 4294967295, %s1170_s29   ;;  %s38_s9 = sadd.s32 1, %s1166_s28  ;;  %s1170_s29 = sphi %s1233_s29, %s26_s29   ;;  %s1166_s28 = sphi %s1231_s28, %s1387_s28   ;;  %s1162_s27 = sphi %s1229_s27, %s1386_s27  }
   0x8   : > { %p40_p0 = scmp.ge.s32.totalorder %s38_s9, 2  ;;  %p803_p1 = scmp.ge.s32.totalorder %s1170_s29, 1 }
   0x9   : > { %p248_p2 = scmp.lt.s32.totalorder %s1170_s29, 3  ;;  %p965_p4 = scmp.eq.s32.totalorder %s1245_s30, 0 }
   0xa   : > { %s1389_s9 = smov (%p40_p0, %s38_s9), 0  ;;  %s1172_s11 = smov [#allocation11]  }
   0xb   : > { %p1252_p3 = pnand %p803_p1, %p248_p2  ;;  %s260_s12 = sshll.u32 %s1172_s11, 4  ;;  %s261_s12 = int_to_ptr.vmem [resolvable:$true] %s260_s12 }
   0xc   : > { %s1173_s14 = smov [#allocation12]   ;;  %s1025_s16 = scalar_lea.vmem %s261_s12, 2048 }
   0xd   : > { %p951_p5 = pneg %p1252_p3  ;;  %s282_s15 = sshll.u32 %s1173_s14, 4  ;;  %s283_s15 = int_to_ptr.vmem [resolvable:$true] %s282_s15 }
   0xe   : > { %p1026_p8 = scmp.ne.s32.totalorder %s261_s12, %s1025_s16  ;;  %p1033_p11 = scmp.lt.s32.totalorder %s261_s12, %s261_s12 }
   0xf   : > { %p1261_p6 = pnand %p965_p4, %p951_p5  ;;  %p1034_p12 = scmp.lt.s32.totalorder %s1025_s16, %s1025_s16 }
  0x11   : > { %p1016_p7 = pneg %p1261_p6  ;;  %p1035_p13 = por %p1034_p12, %p1033_p11 }
  0x13   : > { %p1028_p9 = pnand %p1026_p8, %p1016_p7 }
  0x15   : > { %p1029_p10 = pneg %p1028_p9 }
  0x17   : > { %p1036_p0 = pnand %p1035_p13, %p1029_p10 }
  0x19   : > { %1039 = shalt.err (!%p1036_p0)
}
  0x1a   : > { %s1174_s17 = smov 128   ;;  %s1175_s18 = smov 8  }
  0x1b   : > { %954 = dma.hbm_to_vmem [thread:$0]  (!%p1261_p6), %s1376_s2, 2048, %s261_s12, [#allocation10], %s1174_s17, %s1174_s17, %s1175_s18  }
  0x1c   : > { %p967_p1 = scmp.lt.s32.totalorder %s1170_s29, 2  ;;  %s1051_s21 = scalar_lea.vmem %s283_s15, 2048 }
  0x1d   : > { %p1052_p2 = scmp.ne.s32.totalorder %s283_s15, %s1051_s21  ;;  %p1059_p9 = scmp.lt.s32.totalorder %s283_s15, %s283_s15 }
  0x1e   : > { %p1060_p10 = scmp.lt.s32.totalorder %s1051_s21, %s1051_s21 }
  0x1f   : > { %p1054_p5 = pnand %p1052_p2, %p1016_p7 }
  0x20   : > { %p1061_p11 = por %p1060_p10, %p1059_p9 }
  0x21   : > { %p1055_p8 = pneg %p1054_p5 }
  0x23   : > { %p1062_p12 = pnand %p1061_p11, %p1055_p8 }
  0x25   : > { %1065 = shalt.err (!%p1062_p12)
}
  0x26   : > { %957 = dma.hbm_to_vmem [thread:$0]  (!%p1261_p6), %s1380_s6, 2048, %s283_s15, [#allocation13], %s1174_s17, %s1174_s17, %s1175_s18  }
  0x27   : > { %p968_p13 = scmp.eq.s32.totalorder %s1170_s29, 0  ;;  %s1176_s24 = smov [#allocation6]  }
  0x28   : > { %s312_s25 = sshll.u32 %s1176_s24, 4  ;;  %s319_s26 = sand.u32 1, %s1170_s29   ;;  %s313_s25 = int_to_ptr.vmem [resolvable:$true] %s312_s25 }
  0x29   : > { %p1288_p7 = pnand %p968_p13, %p967_p1  ;;  %s1177_s12 = smov [#allocation9]  }
  0x2a   : > { %s331_s13 = sshll.u32 %s1177_s12, 4  ;;  %s1077_s14 = scalar_lea.vmem %s313_s25, 128  ;;  %s332_s13 = int_to_ptr.vmem [resolvable:$true] %s331_s13 }
  0x2b   : > { %p1068_p0 = pneg %p1288_p7  ;;  %p1078_p2 = scmp.ne.s32.totalorder %s313_s25, %s1077_s14 }
  0x2c   : > { %s1084_s15 = scalar_lea.vmem %s313_s25, 256  ;;  %p1085_p8 = scmp.lt.s32.totalorder %s313_s25, %s313_s25 }
  0x2d   : > { %p1080_p6 = pnand %p1078_p2, %p1068_p0  ;;  %p1086_p9 = scmp.lt.s32.totalorder %s1084_s15, %s1077_s14 }
  0x2f   : > { %p1081_p5 = pneg %p1080_p6  ;;  %p1087_p10 = por %p1086_p9, %p1085_p8 }
  0x31   : > { %p1088_p1 = pnand %p1087_p10, %p1081_p5 }
  0x33   : > { %1091 = shalt.err (!%p1088_p1)
}
  0x34   : > { %961 = dma.hbm_to_vmem [thread:$0]  (!%p1288_p7), %s1374_s0, 128, %s313_s25, [#allocation7]  }
  0x35   : > { %s320_s18 = scalar_lea.sflag [#allocation10], %s319_s26  ;;  %s1103_s19 = scalar_lea.vmem %s332_s13, 128 }
  0x36   : > { %p1104_p11 = scmp.ne.s32.totalorder %s332_s13, %s1103_s19  ;;  %s1110_s20 = scalar_lea.vmem %s332_s13, 256 }
  0x37   : > { %p1111_p2 = scmp.lt.s32.totalorder %s332_s13, %s332_s13  ;;  %p1112_p6 = scmp.lt.s32.totalorder %s1110_s20, %s1103_s19 }
  0x38   : > { %p1106_p12 = pnand %p1104_p11, %p1068_p0 }
  0x39   : > { %p1113_p5 = por %p1112_p6, %p1111_p2 }
  0x3a   : > { %p1107_p13 = pneg %p1106_p12 }
  0x3c   : > { %p1114_p8 = pnand %p1113_p5, %p1107_p13 }
  0x3e   : > { %1117 = shalt.err (!%p1114_p8)
}
  0x3f   : > { %964 = dma.hbm_to_vmem [thread:$0]  (!%p1288_p7), %s1375_s1, 128, %s332_s13, %s320_s18  }
  0x40   : > { %340 = sbr.rel (%p1252_p3) target bundleno = 810 (0x32a), region = 52 }
  0x45   : > { %1141 = dma.done.wait (%p965_p4), [#allocation7], 128  }
  0x46   : > { %1143 = vsyncadd (%p965_p4), [#allocation7], 4294967168  ;;  %s351_s23 = sand.u32 1, %s1245_s30  }
  0x47   : > { %s352_s24 = scalar_lea.sflag [#allocation10], %s351_s23 }
  0x48   : > { %1145 = dma.done.wait (%p965_p4), %s352_s24, 128  }
  0x49   : > { %1147 = vsyncadd (%p965_p4), %s352_s24, 4294967168 }
  0x4a   : > { %1149 = dma.done.wait (%p965_p4), [#allocation10], 2048  }
  0x4b   : > { %1151 = vsyncadd (%p965_p4), [#allocation10], 4294965248 }
  0x4c   : > { %1153 = dma.done.wait (%p965_p4), [#allocation13], 2048  }
  0x4d   : > { %1155 = vsyncadd (%p965_p4), [#allocation13], 4294965248  ;;  %p399_p3 = scmp.eq.s32.totalorder %s1162_s27, 0 }
  0x4e   : > { %v1178_v0 = vmov (%p399_p3), 0.0  }
  0x4f   : > { %404 = sbr.rel (!%p399_p3) target bundleno = 84 (0x54), region = 72  ;;  %405 = vst [vmem:[#allocation2] sm:$0x1] (%p399_p3), %v1178_v0  ;;  %406 = vst [vmem:[#allocation3] sm:$0x1] (%p399_p3), %v1178_v0 }
  0x50   : > { %407 = vst [vmem:[#allocation4] sm:$0x1] (%p399_p3), %v1178_v0 }
  0x54 PF: > { %p815_p7 = scmp.ne.s32.totalorder %s1162_s27, 0 }
  0x56   : > { %410 = sbr.rel (%p815_p7) target bundleno = 336 (0x150), region = 76 }
  0x5b   : > { %v427_v1 = vld [vmem:[#allocation11 + $0x78] sm:$0xff]  ;;  %v1179_v2 = vmov 0.0   ;;  %v426_v3 = vld [vmem:[#allocation11 + $0x70] sm:$0xff]  ;;  %vm1180_vm0 = vmmov 0   ;;  %v425_v4 = vld [vmem:[#allocation11 + $0x68] sm:$0xff] }
  0x5c   : > { %859 = vmatprep.subr.mxu0 %v1179_v2  ;;  %891 = vmatprep.mubr.msk.f32.mxu0 %vm1180_vm0, %v1179_v2  ;;  %v424_v5 = vld [vmem:[#allocation11 + $0x60] sm:$0xff]  ;;  %v423_v6 = vld [vmem:[#allocation11 + $0x58] sm:$0xff]  ;;  %v422_v7 = vld [vmem:[#allocation11 + $0x50] sm:$0xff] }
  0x5d   : > { %860 = vmatpush3.msra.mxu0 %v427_v1  ;;  %v421_v8 = vld [vmem:[#allocation11 + $0x48] sm:$0xff]  ;;  %v420_v9 = vld [vmem:[#allocation11 + $0x40] sm:$0xff]  ;;  %v419_v10 = vld [vmem:[#allocation11 + $0x38] sm:$0xff] }
  0x5e   : > { %861 = vmatprep.subr.mxu0 %v1179_v2  ;;  %v418_v11 = vld [vmem:[#allocation11 + $0x30] sm:$0xff]  ;;  %v417_v12 = vld [vmem:[#allocation11 + $0x28] sm:$0xff]  ;;  %v416_v13 = vld [vmem:[#allocation11 + $0x20] sm:$0xff] }
  0x5f   : > { %862 = vmatpush3.msra.mxu0 %v426_v3  ;;  %v415_v14 = vld [vmem:[#allocation11 + $0x18] sm:$0xff]  ;;  %v414_v15 = vld [vmem:[#allocation11 + $0x10] sm:$0xff]  ;;  %v413_v16 = vld [vmem:[#allocation11 + $0x8] sm:$0xff] }
  0x60   : > { %863 = vmatprep.subr.mxu0 %v1179_v2  ;;  %v412_v17 = vld [vmem:[#allocation11] sm:$0xff]  ;;  %v816_v19 = vld [vmem:[%s1377_s3] ss:$0 sm:$0xff]  ;;  %v517_v36 = vld [vmem:[#allocation3] sm:$0x1] }
  0x61   : > { %864 = vmatpush3.msra.mxu0 %v425_v4  ;;  %v411_v18 = vld [vmem:[#allocation6] sm:$0xff]  ;;  %v508_v33 = vld [vmem:[#allocation2] sm:$0x1] }
  0x62   : > { %865 = vmatprep.subr.mxu0 %v1179_v2 }
  0x63   : > { %866 = vmatpush3.msra.mxu0 %v424_v5 }
  0x64   : > { %867 = vmatprep.subr.mxu0 %v1179_v2 }
  0x65   : > { %868 = vmatpush3.msra.mxu0 %v423_v6 }
  0x66   : > { %869 = vmatprep.subr.mxu0 %v1179_v2 }
  0x67   : > { %870 = vmatpush3.msra.mxu0 %v422_v7 }
  0x68   : > { %871 = vmatprep.subr.mxu0 %v1179_v2 }
  0x69   : > { %872 = vmatpush3.msra.mxu0 %v421_v8 }
  0x6a   : > { %873 = vmatprep.subr.mxu0 %v1179_v2 }
  0x6b   : > { %874 = vmatpush3.msra.mxu0 %v420_v9 }
  0x6c   : > { %875 = vmatprep.subr.mxu0 %v1179_v2 }
  0x6d   : > { %876 = vmatpush3.msra.mxu0 %v419_v10 }
  0x6e   : > { %877 = vmatprep.subr.mxu0 %v1179_v2 }
  0x6f   : > { %878 = vmatpush3.msra.mxu0 %v418_v11 }
  0x70   : > { %879 = vmatprep.subr.mxu0 %v1179_v2 }
  0x71   : > { %880 = vmatpush3.msra.mxu0 %v417_v12 }
  0x72   : > { %881 = vmatprep.subr.mxu0 %v1179_v2 }
  0x73   : > { %882 = vmatpush3.msra.mxu0 %v416_v13 }
  0x74   : > { %883 = vmatprep.subr.mxu0 %v1179_v2 }
  0x75   : > { %884 = vmatpush3.msra.mxu0 %v415_v14 }
  0x76   : > { %885 = vmatprep.subr.mxu0 %v1179_v2 }
  0x77   : > { %886 = vmatpush3.msra.mxu0 %v414_v15 }
  0x78   : > { %887 = vmatprep.subr.mxu0 %v1179_v2 }
  0x79   : > { %888 = vmatpush3.msra.mxu0 %v413_v16 }
  0x7a   : > { %889 = vmatprep.subr.mxu0 %v1179_v2 }
  0x7b   : > { %890 = vmatpush3.msra.mxu0 %v412_v17 }
  0x7c   : > { %892 = vmatmul.mubr.f32.vlgmr.msra.gmra.mxu0 %v411_v18 }
 0x13c   : > { %v501_v20 = vpop.f32.mrf.mxu0 }
 0x13d   : > { %v502_v21 = vadd.f32 %v816_v19, %v501_v20 }
 0x13e   : > { %v893_v22 = vpop.f32.mrf.mxu0 }
 0x13f   : > { %507 = vst [vmem:[#allocation5] sm:$0xff] %v502_v21  ;;  %v509_v23 = vrot.slane %v502_v21, 4  ;;  %v518_v24 = vmul.f32 %v502_v21, %v502_v21 }
 0x141   : > { %v510_v25 = vadd.f32 %v509_v23, %v502_v21  ;;  %v519_v26 = vrot.slane %v518_v24, 4 }
 0x143   : > { %v511_v27 = vrot.slane %v510_v25, 2  ;;  %v520_v28 = vadd.f32 %v519_v26, %v518_v24 }
 0x145   : > { %v512_v29 = vadd.f32 %v511_v27, %v510_v25  ;;  %v521_v30 = vrot.slane %v520_v28, 2 }
 0x147   : > { %v513_v31 = vrot.slane %v512_v29, 1  ;;  %v522_v32 = vadd.f32 %v521_v30, %v520_v28 }
 0x149   : > { %v514_v34 = vadd.f32 %v513_v31, %v512_v29  ;;  %v523_v35 = vrot.slane %v522_v32, 1 }
 0x14b   : > { %v515_v37 = vadd.f32 %v514_v34, %v508_v33  ;;  %v524_v38 = vadd.f32 %v523_v35, %v522_v32 }
 0x14d   : > { %516 = vst [vmem:[#allocation2] sm:$0x1] %v515_v37  ;;  %v525_v39 = vadd.f32 %v524_v38, %v517_v36 }
 0x14f   : > { %526 = vst [vmem:[#allocation3] sm:$0x1] %v525_v39 }
 0x150 PF: > { %p817_p4 = scmp.ne.s32.totalorder %s1162_s27, 1 }
 0x152   : > { %530 = sbr.rel (%p817_p4) target bundleno = 804 (0x324), region = 80 }
 0x157   : > { %v583_v40 = vld [vmem:[#allocation12 + $0x78] sm:$0xff]  ;;  %v1181_v41 = vmov 0.0   ;;  %v582_v42 = vld [vmem:[#allocation12 + $0x70] sm:$0xff]  ;;  %vm1182_vm1 = vmmov 0   ;;  %v581_v43 = vld [vmem:[#allocation12 + $0x68] sm:$0xff]  ;;  %v547_v57 = vlaneseq  ;;  %vm677_vm2 = vcmask 1040384  }
 0x158   : > { %894 = vmatprep.subr.mxu0 %v1181_v41  ;;  %926 = vmatprep.mubr.msk.f32.mxu0 %vm1182_vm1, %v1181_v41  ;;  %v580_v44 = vld [vmem:[#allocation12 + $0x60] sm:$0xff]  ;;  %v534_v45 = vld [vmem:[#allocation2] sm:$0x1]  ;;  %v536_v47 = vld [vmem:[#allocation3] sm:$0x1] }
 0x159   : > { %895 = vmatpush3.msra.mxu0 %v583_v40  ;;  %v535_v46 = vmul.f32 0.125, %v534_v45  ;;  %v579_v48 = vld [vmem:[#allocation12 + $0x58] sm:$0xff]  ;;  %v537_v49 = vmul.f32 0.125, %v536_v47  ;;  %v578_v51 = vld [vmem:[#allocation12 + $0x50] sm:$0xff]  ;;  %v577_v53 = vld [vmem:[#allocation12 + $0x48] sm:$0xff]  ;;  %v548_v60 = vshrl.u32 %v547_v57, 7 }
 0x15a   : > { %896 = vmatprep.subr.mxu0 %v1181_v41  ;;  %v576_v55 = vld [vmem:[#allocation12 + $0x40] sm:$0xff]  ;;  %v575_v58 = vld [vmem:[#allocation12 + $0x38] sm:$0xff]  ;;  %v574_v59 = vld [vmem:[#allocation12 + $0x30] sm:$0xff] }
 0x15b   : > { %897 = vmatpush3.msra.mxu0 %v582_v42  ;;  %v538_v50 = vmul.f32 %v535_v46, %v535_v46  ;;  %v573_v61 = vld [vmem:[#allocation12 + $0x28] sm:$0xff]  ;;  %v572_v62 = vld [vmem:[#allocation12 + $0x20] sm:$0xff]  ;;  %v549_v63 = vsub.s32 0, %v548_v60  ;;  %v571_v0 = vld [vmem:[#allocation12 + $0x18] sm:$0xff] }
 0x15c   : > { %898 = vmatprep.subr.mxu0 %v1181_v41  ;;  %v570_v1 = vld [vmem:[#allocation12 + $0x10] sm:$0xff]  ;;  %v569_v3 = vld [vmem:[#allocation12 + $0x8] sm:$0xff]  ;;  %v533_v4 = vld [vmem:[#allocation5] sm:$0xff] }
 0x15d   : > { %899 = vmatpush3.msra.mxu0 %v581_v43  ;;  %v539_v52 = vsub.f32 %v537_v49, %v538_v50  ;;  %v550_v2 = vrot.slane %v535_v46, %v549_v63  ;;  %v543_v5 = vld [vmem:[%s1378_s4] sm:$0x1]  ;;  %v568_v7 = vld [vmem:[#allocation12] sm:$0xff]  ;;  %v664_v27 = vld [vmem:[#allocation4] sm:$0x1] }
 0x15e   : > { %900 = vmatprep.subr.mxu0 %v1181_v41  ;;  %v818_v11 = vld [vmem:[%s1379_s5] ss:$0 sm:$0xff] }
 0x15f   : > { %901 = vmatpush3.msra.mxu0 %v580_v44  ;;  %v540_v54 = vmax.f32 %v539_v52, 0.0  ;;  %v552_v9 = vsub.f32 %v533_v4, %v550_v2  ;;  %v819_v15 = vld [vmem:[%s1381_s7] ss:$0 sm:$0xff] }
 0x160   : > { %902 = vmatprep.subr.mxu0 %v1181_v41  ;;  %v661_v17 = vld [vmem:[#allocation9] sm:$0xff] }
 0x161   : > { %903 = vmatpush3.msra.mxu0 %v579_v48  ;;  %v541_v56 = vadd.f32 1e-05, %v540_v54 }
 0x162   : > { %904 = vmatprep.subr.mxu0 %v1181_v41 }
 0x163   : > { %905 = vmatpush3.msra.mxu0 %v578_v51  ;;  %1012 = vrsqrt.f32 %v541_v56 }
 0x164   : > { %906 = vmatprep.subr.mxu0 %v1181_v41 }
 0x165   : > { %907 = vmatpush3.msra.mxu0 %v577_v53 }
 0x166   : > { %908 = vmatprep.subr.mxu0 %v1181_v41 }
 0x167   : > { %909 = vmatpush3.msra.mxu0 %v576_v55 }
 0x168   : > { %910 = vmatprep.subr.mxu0 %v1181_v41 }
 0x169   : > { %911 = vmatpush3.msra.mxu0 %v575_v58 }
 0x16a   : > { %912 = vmatprep.subr.mxu0 %v1181_v41 }
 0x16b   : > { %913 = vmatpush3.msra.mxu0 %v574_v59 }
 0x16c   : > { %914 = vmatprep.subr.mxu0 %v1181_v41 }
 0x16d   : > { %915 = vmatpush3.msra.mxu0 %v573_v61 }
 0x16e   : > { %916 = vmatprep.subr.mxu0 %v1181_v41 }
 0x16f   : > { %917 = vmatpush3.msra.mxu0 %v572_v62 }
 0x170   : > { %918 = vmatprep.subr.mxu0 %v1181_v41  ;;  %v1013_v6 = vpop.eup %1012 }
 0x171   : > { %919 = vmatpush3.msra.mxu0 %v571_v0  ;;  %v544_v8 = vmul.f32 %v1013_v6, %v543_v5 }
 0x172   : > { %920 = vmatprep.subr.mxu0 %v1181_v41 }
 0x173   : > { %921 = vmatpush3.msra.mxu0 %v570_v1  ;;  %v557_v10 = vrot.slane %v544_v8, %v549_v63 }
 0x174   : > { %922 = vmatprep.subr.mxu0 %v1181_v41 }
 0x175   : > { %923 = vmatpush3.msra.mxu0 %v569_v3  ;;  %v559_v12 = vmul.f32 %v557_v10, %v552_v9 }
 0x176   : > { %924 = vmatprep.subr.mxu0 %v1181_v41 }
 0x177   : > { %925 = vmatpush3.msra.mxu0 %v568_v7  ;;  %v566_v13 = vadd.f32 %v818_v11, %v559_v12 }
 0x179   : > { %v567_v14 = vmax.f32 %v566_v13, 0.0 }
 0x17b   : > { %927 = vmatmul.mubr.f32.vlgmr.msra.gmra.mxu0 %v567_v14 }
 0x23b   : > { %v657_v16 = vpop.f32.mrf.mxu0 }
 0x23c   : > { %v658_v18 = vadd.f32 %v819_v15, %v657_v16 }
 0x23d   : > { %v928_v19 = vpop.f32.mrf.mxu0 }
 0x23e   : > { %v662_v20 = vsub.f32 %v658_v18, %v661_v17 }
 0x240   : > { %v663_v21 = vmul.f32 %v662_v20, %v662_v20 }
 0x242   : > { %v665_v22 = vrot.slane %v663_v21, 4 }
 0x244   : > { %v666_v23 = vadd.f32 %v665_v22, %v663_v21 }
 0x246   : > { %v667_v24 = vrot.slane %v666_v23, 2 }
 0x248   : > { %v668_v25 = vadd.f32 %v667_v24, %v666_v23 }
 0x24a   : > { %v669_v26 = vrot.slane %v668_v25, 1 }
 0x24c   : > { %v670_v28 = vadd.f32 %v669_v26, %v668_v25 }
 0x24e   : > { %v671_v29 = vadd.f32 %v670_v28, %v664_v27 }
 0x250   : > { %672 = vst [vmem:[#allocation4] sm:$0x1] %v671_v29 }
 0x257   : > { %v676_v30 = vld [vmem:[#allocation4] sm:$0x1] }
 0x258   : > { %v678_v31 = vsel %vm677_vm2, %v676_v30, 0.0 }
 0x259   : > { %679 = vadd.xlane.f32.xlu0 %v678_v31 }
 0x2e2   : > { %v680_v32 = vpop.xlane.xlu0 %679 }
 0x2e3   : > { %v681_v33 = vrot.slane %v680_v32, 4 }
 0x2e5   : > { %v682_v34 = vadd.f32 %v681_v33, %v680_v32 }
 0x2e7   : > { %v683_v35 = vrot.slane %v682_v34, 2 }
 0x2e9   : > { %v684_v36 = vadd.f32 %v683_v35, %v682_v34 }
 0x2eb   : > { %v685_v37 = vrot.slane %v684_v36, 1 }
 0x2ed   : > { %v686_v38 = vadd.f32 %v685_v37, %v684_v36 }
 0x2ef   : > { %929 = vpush %v686_v38 }
 0x320   : > { %s930_s15 = spop %929 }
 0x321   : > { %s688_s16 = smul.f32 0.00390625, %s930_s15 }
 0x323   : > { %690 = sst [smem:[#allocation14]] %s688_s16 }
 0x324 PF: > { %p974_p0 = scmp.eq.s32.totalorder %s1245_s30, 1  ;;  %s1183_s17 = smov [#allocation14]  }
 0x326   : > { %948 = dma.smem_to_hbm (%p974_p0), %s1183_s17, 16, %s1382_s8, [#allocation8]  }
 0x327   : > { %1157 = dma.done.wait (%p974_p0), [#allocation8], 16  }
 0x328   : > { %1159 = vsyncadd (%p974_p0), [#allocation8], 4294967280 }
 0x329   : > { %704 = sfence }
 0x32a PF: > { %s26_s29 = sadd.s32 1, %s1170_s29   ;;  %s1386_s27 = smov %s1166_s28 }
 0x32b   : > { %p23_p9 = scmp.ge.s32.totalorder %s26_s29, 4   ;;  %s1387_s28 = smov %s1389_s9 }
 0x32d   :  { %25 = sbr.rel (!%p23_p9) target bundleno = 7 (0x7), region = 129 }
 0x332   :  { %710 = vsyncpa [#allocation7], 1 }
 0x333   :  { %712 = vsyncpa [#allocation7 + $0x1], 1 }
 0x334   :  { %713 = vsyncpa [#allocation10], 1 }
 0x335   :  { %715 = vsyncpa [#allocation10 + $0x1], 1 }
 0x336   :  { %716 = vsyncpa [#allocation13], 1 }
 0x337   :  { %717 = vsyncpa [#allocation8], 1 }
 0x338   :  { %719 = vsyncpa [#allocation8 + $0x1], 1 }

// kernel: tpu_custom_call.1
= control target key start
LH: loop header
LB: loop body
LE: loop exit
PB: predicated region body
PF: predicated region fallthrough
CT: control target
= control target key end

     0   :  { %13 = vsyncpa [#allocation7], 0  ;;  %s1374_s0 = inlined_call_operand.hbm [shape: f32[8,128], index: 0, kind: input, shape index: {}]   ;;  %s1375_s1 = inlined_call_operand.hbm [shape: f32[8,128], index: 1, kind: input, shape index: {}]   ;;  %s1376_s2 = inlined_call_operand.hbm [shape: f32[128,128], index: 2, kind: input, shape index: {}]   ;;  %s1377_s3 = inlined_call_operand.vmem [shape: f32[1,128], index: 3, kind: input, shape index: {}]   ;;  %s1378_s4 = inlined_call_operand.vmem [shape: f32[1,128], index: 4, kind: input, shape index: {}]   ;;  %s1379_s5 = inlined_call_operand.vmem [shape: f32[1,128], index: 5, kind: input, shape index: {}]   ;;  %s1380_s6 = inlined_call_operand.hbm [shape: f32[128,128], index: 6, kind: input, shape index: {}]   ;;  %s1381_s7 = inlined_call_operand.vmem [shape: f32[1,128], index: 7, kind: input, shape index: {}]   ;;  %s1382_s8 = inlined_call_operand.hbm [shape: f32[1,1], index: 8, kind: output, shape index: {}]  }
   0x1   :  { %15 = vsyncpa [#allocation7 + $0x1], 0 }
   0x2   :  { %16 = vsyncpa [#allocation10], 0 }
   0x3   :  { %18 = vsyncpa [#allocation10 + $0x1], 0 }
   0x4   :  { %19 = vsyncpa [#allocation13], 0 }
   0x5   :  { %20 = vsyncpa [#allocation8], 0  ;;  %s1229_s27 = smov 0   ;;  %s1231_s28 = smov 0  }
   0x6   :  { %s1233_s29 = smov 0  }
   0x7 LB: > { %s1245_s30 = sadd.s32 4294967295, %s1170_s29   ;;  %s38_s9 = sadd.s32 1, %s1166_s28  ;;  %s1170_s29 = sphi %s1233_s29, %s26_s29   ;;  %s1166_s28 = sphi %s1231_s28, %s1387_s28   ;;  %s1162_s27 = sphi %s1229_s27, %s1386_s27  }
   0x8   : > { %p40_p0 = scmp.ge.s32.totalorder %s38_s9, 2  ;;  %p803_p1 = scmp.ge.s32.totalorder %s1170_s29, 1 }
   0x9   : > { %p248_p2 = scmp.lt.s32.totalorder %s1170_s29, 3  ;;  %p965_p4 = scmp.eq.s32.totalorder %s1245_s30, 0 }
   0xa   : > { %s1389_s9 = smov (%p40_p0, %s38_s9), 0  ;;  %s1172_s11 = smov [#allocation11]  }
   0xb   : > { %p1252_p3 = pnand %p803_p1, %p248_p2  ;;  %s260_s12 = sshll.u32 %s1172_s11, 4  ;;  %s261_s12 = int_to_ptr.vmem [resolvable:$true] %s260_s12 }
   0xc   : > { %s1173_s14 = smov [#allocation12]   ;;  %s1025_s16 = scalar_lea.vmem %s261_s12, 2048 }
   0xd   : > { %p951_p5 = pneg %p1252_p3  ;;  %s282_s15 = sshll.u32 %s1173_s14, 4  ;;  %s283_s15 = int_to_ptr.vmem [resolvable:$true] %s282_s15 }
   0xe   : > { %p1026_p8 = scmp.ne.s32.totalorder %s261_s12, %s1025_s16  ;;  %p1033_p11 = scmp.lt.s32.totalorder %s261_s12, %s261_s12 }
   0xf   : > { %p1261_p6 = pnand %p965_p4, %p951_p5  ;;  %p1034_p12 = scmp.lt.s32.totalorder %s1025_s16, %s1025_s16 }
  0x11   : > { %p1016_p7 = pneg %p1261_p6  ;;  %p1035_p13 = por %p1034_p12, %p1033_p11 }
  0x13   : > { %p1028_p9 = pnand %p1026_p8, %p1016_p7 }
  0x15   : > { %p1029_p10 = pneg %p1028_p9 }
  0x17   : > { %p1036_p0 = pnand %p1035_p13, %p1029_p10 }
  0x19   : > { %1039 = shalt.err (!%p1036_p0)
}
  0x1a   : > { %s1174_s17 = smov 128   ;;  %s1175_s18 = smov 8  }
  0x1b   : > { %954 = dma.hbm_to_vmem [thread:$0]  (!%p1261_p6), %s1376_s2, 2048, %s261_s12, [#allocation10], %s1174_s17, %s1174_s17, %s1175_s18  }
  0x1c   : > { %p967_p1 = scmp.lt.s32.totalorder %s1170_s29, 2  ;;  %s1051_s21 = scalar_lea.vmem %s283_s15, 2048 }
  0x1d   : > { %p1052_p2 = scmp.ne.s32.totalorder %s283_s15, %s1051_s21  ;;  %p1059_p9 = scmp.lt.s32.totalorder %s283_s15, %s283_s15 }
  0x1e   : > { %p1060_p10 = scmp.lt.s32.totalorder %s1051_s21, %s1051_s21 }
  0x1f   : > { %p1054_p5 = pnand %p1052_p2, %p1016_p7 }
  0x20   : > { %p1061_p11 = por %p1060_p10, %p1059_p9 }
  0x21   : > { %p1055_p8 = pneg %p1054_p5 }
  0x23   : > { %p1062_p12 = pnand %p1061_p11, %p1055_p8 }
  0x25   : > { %1065 = shalt.err (!%p1062_p12)
}
  0x26   : > { %957 = dma.hbm_to_vmem [thread:$0]  (!%p1261_p6), %s1380_s6, 2048, %s283_s15, [#allocation13], %s1174_s17, %s1174_s17, %s1175_s18  }
  0x27   : > { %p968_p13 = scmp.eq.s32.totalorder %s1170_s29, 0  ;;  %s1176_s24 = smov [#allocation6]  }
  0x28   : > { %s312_s25 = sshll.u32 %s1176_s24, 4  ;;  %s319_s26 = sand.u32 1, %s1170_s29   ;;  %s313_s25 = int_to_ptr.vmem [resolvable:$true] %s312_s25 }
  0x29   : > { %p1288_p7 = pnand %p968_p13, %p967_p1  ;;  %s1177_s12 = smov [#allocation9]  }
  0x2a   : > { %s331_s13 = sshll.u32 %s1177_s12, 4  ;;  %s1077_s14 = scalar_lea.vmem %s313_s25, 128  ;;  %s332_s13 = int_to_ptr.vmem [resolvable:$true] %s331_s13 }
  0x2b   : > { %p1068_p0 = pneg %p1288_p7  ;;  %p1078_p2 = scmp.ne.s32.totalorder %s313_s25, %s1077_s14 }
  0x2c   : > { %s1084_s15 = scalar_lea.vmem %s313_s25, 256  ;;  %p1085_p8 = scmp.lt.s32.totalorder %s313_s25, %s313_s25 }
  0x2d   : > { %p1080_p6 = pnand %p1078_p2, %p1068_p0  ;;  %p1086_p9 = scmp.lt.s32.totalorder %s1084_s15, %s1077_s14 }
  0x2f   : > { %p1081_p5 = pneg %p1080_p6  ;;  %p1087_p10 = por %p1086_p9, %p1085_p8 }
  0x31   : > { %p1088_p1 = pnand %p1087_p10, %p1081_p5 }
  0x33   : > { %1091 = shalt.err (!%p1088_p1)
}
  0x34   : > { %961 = dma.hbm_to_vmem [thread:$0]  (!%p1288_p7), %s1374_s0, 128, %s313_s25, [#allocation7]  }
  0x35   : > { %s320_s18 = scalar_lea.sflag [#allocation10], %s319_s26  ;;  %s1103_s19 = scalar_lea.vmem %s332_s13, 128 }
  0x36   : > { %p1104_p11 = scmp.ne.s32.totalorder %s332_s13, %s1103_s19  ;;  %s1110_s20 = scalar_lea.vmem %s332_s13, 256 }
  0x37   : > { %p1111_p2 = scmp.lt.s32.totalorder %s332_s13, %s332_s13  ;;  %p1112_p6 = scmp.lt.s32.totalorder %s1110_s20, %s1103_s19 }
  0x38   : > { %p1106_p12 = pnand %p1104_p11, %p1068_p0 }
  0x39   : > { %p1113_p5 = por %p1112_p6, %p1111_p2 }
  0x3a   : > { %p1107_p13 = pneg %p1106_p12 }
  0x3c   : > { %p1114_p8 = pnand %p1113_p5, %p1107_p13 }
  0x3e   : > { %1117 = shalt.err (!%p1114_p8)
}
  0x3f   : > { %964 = dma.hbm_to_vmem [thread:$0]  (!%p1288_p7), %s1375_s1, 128, %s332_s13, %s320_s18  }
  0x40   : > { %340 = sbr.rel (%p1252_p3) target bundleno = 810 (0x32a), region = 52 }
  0x45   : > { %1141 = dma.done.wait (%p965_p4), [#allocation7], 128  }
  0x46   : > { %1143 = vsyncadd (%p965_p4), [#allocation7], 4294967168  ;;  %s351_s23 = sand.u32 1, %s1245_s30  }
  0x47   : > { %s352_s24 = scalar_lea.sflag [#allocation10], %s351_s23 }
  0x48   : > { %1145 = dma.done.wait (%p965_p4), %s352_s24, 128  }
  0x49   : > { %1147 = vsyncadd (%p965_p4), %s352_s24, 4294967168 }
  0x4a   : > { %1149 = dma.done.wait (%p965_p4), [#allocation10], 2048  }
  0x4b   : > { %1151 = vsyncadd (%p965_p4), [#allocation10], 4294965248 }
  0x4c   : > { %1153 = dma.done.wait (%p965_p4), [#allocation13], 2048  }
  0x4d   : > { %1155 = vsyncadd (%p965_p4), [#allocation13], 4294965248  ;;  %p399_p3 = scmp.eq.s32.totalorder %s1162_s27, 0 }
  0x4e   : > { %v1178_v0 = vmov (%p399_p3), 0.0  }
  0x4f   : > { %404 = sbr.rel (!%p399_p3) target bundleno = 84 (0x54), region = 72  ;;  %405 = vst [vmem:[#allocation2] sm:$0x1] (%p399_p3), %v1178_v0  ;;  %406 = vst [vmem:[#allocation3] sm:$0x1] (%p399_p3), %v1178_v0 }
  0x50   : > { %407 = vst [vmem:[#allocation4] sm:$0x1] (%p399_p3), %v1178_v0 }
  0x54 PF: > { %p815_p7 = scmp.ne.s32.totalorder %s1162_s27, 0 }
  0x56   : > { %410 = sbr.rel (%p815_p7) target bundleno = 336 (0x150), region = 76 }
  0x5b   : > { %v427_v1 = vld [vmem:[#allocation11 + $0x78] sm:$0xff]  ;;  %v1179_v2 = vmov 0.0   ;;  %v426_v3 = vld [vmem:[#allocation11 + $0x70] sm:$0xff]  ;;  %vm1180_vm0 = vmmov 0   ;;  %v425_v4 = vld [vmem:[#allocation11 + $0x68] sm:$0xff] }
  0x5c   : > { %859 = vmatprep.subr.mxu0 %v1179_v2  ;;  %891 = vmatprep.mubr.msk.f32.mxu0 %vm1180_vm0, %v1179_v2  ;;  %v424_v5 = vld [vmem:[#allocation11 + $0x60] sm:$0xff]  ;;  %v423_v6 = vld [vmem:[#allocation11 + $0x58] sm:$0xff]  ;;  %v422_v7 = vld [vmem:[#allocation11 + $0x50] sm:$0xff] }
  0x5d   : > { %860 = vmatpush3.msra.mxu0 %v427_v1  ;;  %v421_v8 = vld [vmem:[#allocation11 + $0x48] sm:$0xff]  ;;  %v420_v9 = vld [vmem:[#allocation11 + $0x40] sm:$0xff]  ;;  %v419_v10 = vld [vmem:[#allocation11 + $0x38] sm:$0xff] }
  0x5e   : > { %861 = vmatprep.subr.mxu0 %v1179_v2  ;;  %v418_v11 = vld [vmem:[#allocation11 + $0x30] sm:$0xff]  ;;  %v417_v12 = vld [vmem:[#allocation11 + $0x28] sm:$0xff]  ;;  %v416_v13 = vld [vmem:[#allocation11 + $0x20] sm:$0xff] }
  0x5f   : > { %862 = vmatpush3.msra.mxu0 %v426_v3  ;;  %v415_v14 = vld [vmem:[#allocation11 + $0x18] sm:$0xff]  ;;  %v414_v15 = vld [vmem:[#allocation11 + $0x10] sm:$0xff]  ;;  %v413_v16 = vld [vmem:[#allocation11 + $0x8] sm:$0xff] }
  0x60   : > { %863 = vmatprep.subr.mxu0 %v1179_v2  ;;  %v412_v17 = vld [vmem:[#allocation11] sm:$0xff]  ;;  %v816_v19 = vld [vmem:[%s1377_s3] ss:$0 sm:$0xff]  ;;  %v517_v36 = vld [vmem:[#allocation3] sm:$0x1] }
  0x61   : > { %864 = vmatpush3.msra.mxu0 %v425_v4  ;;  %v411_v18 = vld [vmem:[#allocation6] sm:$0xff]  ;;  %v508_v33 = vld [vmem:[#allocation2] sm:$0x1] }
  0x62   : > { %865 = vmatprep.subr.mxu0 %v1179_v2 }
  0x63   : > { %866 = vmatpush3.msra.mxu0 %v424_v5 }
  0x64   : > { %867 = vmatprep.subr.mxu0 %v1179_v2 }
  0x65   : > { %868 = vmatpush3.msra.mxu0 %v423_v6 }
  0x66   : > { %869 = vmatprep.subr.mxu0 %v1179_v2 }
  0x67   : > { %870 = vmatpush3.msra.mxu0 %v422_v7 }
  0x68   : > { %871 = vmatprep.subr.mxu0 %v1179_v2 }
  0x69   : > { %872 = vmatpush3.msra.mxu0 %v421_v8 }
  0x6a   : > { %873 = vmatprep.subr.mxu0 %v1179_v2 }
  0x6b   : > { %874 = vmatpush3.msra.mxu0 %v420_v9 }
  0x6c   : > { %875 = vmatprep.subr.mxu0 %v1179_v2 }
  0x6d   : > { %876 = vmatpush3.msra.mxu0 %v419_v10 }
  0x6e   : > { %877 = vmatprep.subr.mxu0 %v1179_v2 }
  0x6f   : > { %878 = vmatpush3.msra.mxu0 %v418_v11 }
  0x70   : > { %879 = vmatprep.subr.mxu0 %v1179_v2 }
  0x71   : > { %880 = vmatpush3.msra.mxu0 %v417_v12 }
  0x72   : > { %881 = vmatprep.subr.mxu0 %v1179_v2 }
  0x73   : > { %882 = vmatpush3.msra.mxu0 %v416_v13 }
  0x74   : > { %883 = vmatprep.subr.mxu0 %v1179_v2 }
  0x75   : > { %884 = vmatpush3.msra.mxu0 %v415_v14 }
  0x76   : > { %885 = vmatprep.subr.mxu0 %v1179_v2 }
  0x77   : > { %886 = vmatpush3.msra.mxu0 %v414_v15 }
  0x78   : > { %887 = vmatprep.subr.mxu0 %v1179_v2 }
  0x79   : > { %888 = vmatpush3.msra.mxu0 %v413_v16 }
  0x7a   : > { %889 = vmatprep.subr.mxu0 %v1179_v2 }
  0x7b   : > { %890 = vmatpush3.msra.mxu0 %v412_v17 }
  0x7c   : > { %892 = vmatmul.mubr.f32.vlgmr.msra.gmra.mxu0 %v411_v18 }
 0x13c   : > { %v501_v20 = vpop.f32.mrf.mxu0 }
 0x13d   : > { %v502_v21 = vadd.f32 %v816_v19, %v501_v20 }
 0x13e   : > { %v893_v22 = vpop.f32.mrf.mxu0 }
 0x13f   : > { %507 = vst [vmem:[#allocation5] sm:$0xff] %v502_v21  ;;  %v509_v23 = vrot.slane %v502_v21, 4  ;;  %v518_v24 = vmul.f32 %v502_v21, %v502_v21 }
 0x141   : > { %v510_v25 = vadd.f32 %v509_v23, %v502_v21  ;;  %v519_v26 = vrot.slane %v518_v24, 4 }
 0x143   : > { %v511_v27 = vrot.slane %v510_v25, 2  ;;  %v520_v28 = vadd.f32 %v519_v26, %v518_v24 }
 0x145   : > { %v512_v29 = vadd.f32 %v511_v27, %v510_v25  ;;  %v521_v30 = vrot.slane %v520_v28, 2 }
 0x147   : > { %v513_v31 = vrot.slane %v512_v29, 1  ;;  %v522_v32 = vadd.f32 %v521_v30, %v520_v28 }
 0x149   : > { %v514_v34 = vadd.f32 %v513_v31, %v512_v29  ;;  %v523_v35 = vrot.slane %v522_v32, 1 }
 0x14b   : > { %v515_v37 = vadd.f32 %v514_v34, %v508_v33  ;;  %v524_v38 = vadd.f32 %v523_v35, %v522_v32 }
 0x14d   : > { %516 = vst [vmem:[#allocation2] sm:$0x1] %v515_v37  ;;  %v525_v39 = vadd.f32 %v524_v38, %v517_v36 }
 0x14f   : > { %526 = vst [vmem:[#allocation3] sm:$0x1] %v525_v39 }
 0x150 PF: > { %p817_p4 = scmp.ne.s32.totalorder %s1162_s27, 1 }
 0x152   : > { %530 = sbr.rel (%p817_p4) target bundleno = 804 (0x324), region = 80 }
 0x157   : > { %v583_v40 = vld [vmem:[#allocation12 + $0x78] sm:$0xff]  ;;  %v1181_v41 = vmov 0.0   ;;  %v582_v42 = vld [vmem:[#allocation12 + $0x70] sm:$0xff]  ;;  %vm1182_vm1 = vmmov 0   ;;  %v581_v43 = vld [vmem:[#allocation12 + $0x68] sm:$0xff]  ;;  %v547_v57 = vlaneseq  ;;  %vm677_vm2 = vcmask 1040384  }
 0x158   : > { %894 = vmatprep.subr.mxu0 %v1181_v41  ;;  %926 = vmatprep.mubr.msk.f32.mxu0 %vm1182_vm1, %v1181_v41  ;;  %v580_v44 = vld [vmem:[#allocation12 + $0x60] sm:$0xff]  ;;  %v534_v45 = vld [vmem:[#allocation2] sm:$0x1]  ;;  %v536_v47 = vld [vmem:[#allocation3] sm:$0x1] }
 0x159   : > { %895 = vmatpush3.msra.mxu0 %v583_v40  ;;  %v535_v46 = vmul.f32 0.125, %v534_v45  ;;  %v579_v48 = vld [vmem:[#allocation12 + $0x58] sm:$0xff]  ;;  %v537_v49 = vmul.f32 0.125, %v536_v47  ;;  %v578_v51 = vld [vmem:[#allocation12 + $0x50] sm:$0xff]  ;;  %v577_v53 = vld [vmem:[#allocation12 + $0x48] sm:$0xff]  ;;  %v548_v60 = vshrl.u32 %v547_v57, 7 }
 0x15a   : > { %896 = vmatprep.subr.mxu0 %v1181_v41  ;;  %v576_v55 = vld [vmem:[#allocation12 + $0x40] sm:$0xff]  ;;  %v575_v58 = vld [vmem:[#allocation12 + $0x38] sm:$0xff]  ;;  %v574_v59 = vld [vmem:[#allocation12 + $0x30] sm:$0xff] }
 0x15b   : > { %897 = vmatpush3.msra.mxu0 %v582_v42  ;;  %v538_v50 = vmul.f32 %v535_v46, %v535_v46  ;;  %v573_v61 = vld [vmem:[#allocation12 + $0x28] sm:$0xff]  ;;  %v572_v62 = vld [vmem:[#allocation12 + $0x20] sm:$0xff]  ;;  %v549_v63 = vsub.s32 0, %v548_v60  ;;  %v571_v0 = vld [vmem:[#allocation12 + $0x18] sm:$0xff] }
 0x15c   : > { %898 = vmatprep.subr.mxu0 %v1181_v41  ;;  %v570_v1 = vld [vmem:[#allocation12 + $0x10] sm:$0xff]  ;;  %v569_v3 = vld [vmem:[#allocation12 + $0x8] sm:$0xff]  ;;  %v533_v4 = vld [vmem:[#allocation5] sm:$0xff] }
 0x15d   : > { %899 = vmatpush3.msra.mxu0 %v581_v43  ;;  %v539_v52 = vsub.f32 %v537_v49, %v538_v50  ;;  %v550_v2 = vrot.slane %v535_v46, %v549_v63  ;;  %v543_v5 = vld [vmem:[%s1378_s4] sm:$0x1]  ;;  %v568_v7 = vld [vmem:[#allocation12] sm:$0xff]  ;;  %v664_v27 = vld [vmem:[#allocation4] sm:$0x1] }
 0x15e   : > { %900 = vmatprep.subr.mxu0 %v1181_v41  ;;  %v818_v11 = vld [vmem:[%s1379_s5] ss:$0 sm:$0xff] }
 0x15f   : > { %901 = vmatpush3.msra.mxu0 %v580_v44  ;;  %v540_v54 = vmax.f32 %v539_v52, 0.0  ;;  %v552_v9 = vsub.f32 %v533_v4, %v550_v2  ;;  %v819_v15 = vld [vmem:[%s1381_s7] ss:$0 sm:$0xff] }
 0x160   : > { %902 = vmatprep.subr.mxu0 %v1181_v41  ;;  %v661_v17 = vld [vmem:[#allocation9] sm:$0xff] }
 0x161   : > { %903 = vmatpush3.msra.mxu0 %v579_v48  ;;  %v541_v56 = vadd.f32 1e-05, %v540_v54 }
 0x162   : > { %904 = vmatprep.subr.mxu0 %v1181_v41 }
 0x163   : > { %905 = vmatpush3.msra.mxu0 %v578_v51  ;;  %1012 = vrsqrt.f32 %v541_v56 }
 0x164   : > { %906 = vmatprep.subr.mxu0 %v1181_v41 }
 0x165   : > { %907 = vmatpush3.msra.mxu0 %v577_v53 }
 0x166   : > { %908 = vmatprep.subr.mxu0 %v1181_v41 }
 0x167   : > { %909 = vmatpush3.msra.mxu0 %v576_v55 }
 0x168   : > { %910 = vmatprep.subr.mxu0 %v1181_v41 }
 0x169   : > { %911 = vmatpush3.msra.mxu0 %v575_v58 }
 0x16a   : > { %912 = vmatprep.subr.mxu0 %v1181_v41 }
 0x16b   : > { %913 = vmatpush3.msra.mxu0 %v574_v59 }
 0x16c   : > { %914 = vmatprep.subr.mxu0 %v1181_v41 }
 0x16d   : > { %915 = vmatpush3.msra.mxu0 %v573_v61 }
 0x16e   : > { %916 = vmatprep.subr.mxu0 %v1181_v41 }
 0x16f   : > { %917 = vmatpush3.msra.mxu0 %v572_v62 }
 0x170   : > { %918 = vmatprep.subr.mxu0 %v1181_v41  ;;  %v1013_v6 = vpop.eup %1012 }
 0x171   : > { %919 = vmatpush3.msra.mxu0 %v571_v0  ;;  %v544_v8 = vmul.f32 %v1013_v6, %v543_v5 }
 0x172   : > { %920 = vmatprep.subr.mxu0 %v1181_v41 }
 0x173   : > { %921 = vmatpush3.msra.mxu0 %v570_v1  ;;  %v557_v10 = vrot.slane %v544_v8, %v549_v63 }
 0x174   : > { %922 = vmatprep.subr.mxu0 %v1181_v41 }
 0x175   : > { %923 = vmatpush3.msra.mxu0 %v569_v3  ;;  %v559_v12 = vmul.f32 %v557_v10, %v552_v9 }
 0x176   : > { %924 = vmatprep.subr.mxu0 %v1181_v41 }
 0x177   : > { %925 = vmatpush3.msra.mxu0 %v568_v7  ;;  %v566_v13 = vadd.f32 %v818_v11, %v559_v12 }
 0x179   : > { %v567_v14 = vmax.f32 %v566_v13, 0.0 }
 0x17b   : > { %927 = vmatmul.mubr.f32.vlgmr.msra.gmra.mxu0 %v567_v14 }
 0x23b   : > { %v657_v16 = vpop.f32.mrf.mxu0 }
 0x23c   : > { %v658_v18 = vadd.f32 %v819_v15, %v657_v16 }
 0x23d   : > { %v928_v19 = vpop.f32.mrf.mxu0 }
 0x23e   : > { %v662_v20 = vsub.f32 %v658_v18, %v661_v17 }
 0x240   : > { %v663_v21 = vmul.f32 %v662_v20, %v662_v20 }
 0x242   : > { %v665_v22 = vrot.slane %v663_v21, 4 }
 0x244   : > { %v666_v23 = vadd.f32 %v665_v22, %v663_v21 }
 0x246   : > { %v667_v24 = vrot.slane %v666_v23, 2 }
 0x248   : > { %v668_v25 = vadd.f32 %v667_v24, %v666_v23 }
 0x24a   : > { %v669_v26 = vrot.slane %v668_v25, 1 }
 0x24c   : > { %v670_v28 = vadd.f32 %v669_v26, %v668_v25 }
 0x24e   : > { %v671_v29 = vadd.f32 %v670_v28, %v664_v27 }
 0x250   : > { %672 = vst [vmem:[#allocation4] sm:$0x1] %v671_v29 }
 0x257   : > { %v676_v30 = vld [vmem:[#allocation4] sm:$0x1] }
 0x258   : > { %v678_v31 = vsel %vm677_vm2, %v676_v30, 0.0 }
 0x259   : > { %679 = vadd.xlane.f32.xlu0 %v678_v31 }
 0x2e2   : > { %v680_v32 = vpop.xlane.xlu0 %679 }
 0x2e3   : > { %v681_v33 = vrot.slane %v680_v32, 4 }
 0x2e5   : > { %v682_v34 = vadd.f32 %v681_v33, %v680_v32 }
 0x2e7   : > { %v683_v35 = vrot.slane %v682_v34, 2 }
 0x2e9   : > { %v684_v36 = vadd.f32 %v683_v35, %v682_v34 }
 0x2eb   : > { %v685_v37 = vrot.slane %v684_v36, 1 }
 0x2ed   : > { %v686_v38 = vadd.f32 %v685_v37, %v684_v36 }
 0x2ef   : > { %929 = vpush %v686_v38 }
 0x320   : > { %s930_s15 = spop %929 }
 0x321   : > { %s688_s16 = smul.f32 0.00390625, %s930_s15 }
 0x323   : > { %690 = sst [smem:[#allocation14]] %s688_s16 }
 0x324 PF: > { %p974_p0 = scmp.eq.s32.totalorder %s1245_s30, 1  ;;  %s1183_s17 = smov [#allocation14]  }
 0x326   : > { %948 = dma.smem_to_hbm (%p974_p0), %s1183_s17, 16, %s1382_s8, [#allocation8]  }
 0x327   : > { %1157 = dma.done.wait (%p974_p0), [#allocation8], 16  }
 0x328   : > { %1159 = vsyncadd (%p974_p0), [#allocation8], 4294967280 }
 0x329   : > { %704 = sfence }
 0x32a PF: > { %s26_s29 = sadd.s32 1, %s1170_s29   ;;  %s1386_s27 = smov %s1166_s28 }
 0x32b   : > { %p23_p9 = scmp.ge.s32.totalorder %s26_s29, 4   ;;  %s1387_s28 = smov %s1389_s9 }
 0x32d   :  { %25 = sbr.rel (!%p23_p9) target bundleno = 7 (0x7), region = 129 }
 0x332   :  { %710 = vsyncpa [#allocation7], 1 }
 0x333   :  { %712 = vsyncpa [#allocation7 + $0x1], 1 }
 0x334   :  { %713 = vsyncpa [#allocation10], 1 }
 0x335   :  { %715 = vsyncpa [#allocation10 + $0x1], 1 }
 0x336   :  { %716 = vsyncpa [#allocation13], 1 }
 0x337   :  { %717 = vsyncpa [#allocation8], 1 }
 0x338   :  { %719 = vsyncpa [#allocation8 + $0x1], 1 }

</bundles_post_ra>
